<compile_context>
chip_gen: v7x
topology: tpu7x:2x2x1
jax: 0.10.0
libtpu: 0.0.40
codegen_flags: <defaults>
</compile_context>

<pallas_src>
import functools

import jax
import jax.numpy as jnp
from jax.experimental import pallas as pl
from jax.experimental.pallas import tpu as pltpu


def _gru_seq_kernel(x2d_ref, wih_ref, whh_ref, bi_ref, bhn_ref,
                    out_ref, hid_ref, gi_ref,
                    *, T, B, D, H, Hp):
    """Whole-sequence GRU in one invocation (PyTorch gate order: r, z, n).

    Gate layout: every "wide" tensor has 3*Hp lanes; gate g occupies lanes
    [g*Hp : g*Hp+H], the remaining lanes of each Hp tile are zero padding.
    """
    # ---- Prologue (off the recurrence critical path) -------------------------
    # Fused input projection for ALL time steps: one (T*B, D) @ (D, 3*Hp)
    # matmul, with the per-gate biases already folded in (b_hh_r / b_hh_z were
    # pre-added in the wrapper; b_ih_* are included for every gate).
    gi_ref[...] = (jnp.dot(x2d_ref[...], wih_ref[...],
                           preferred_element_type=jnp.float32)
                   + bi_ref[...])

    # Loop invariant hoisted once (JAX does not CSE broadcast_in_dim).
    bhn = jnp.broadcast_to(bhn_ref[...], (B, Hp))                       # (B, Hp)

    # ---- Sequential recurrence: ONE h @ W_hh_cat push + gate math per step ---
    def step(t, h):                                                     # h: (B, Hp)
        row = pl.multiple_of(t * B, B)
        gi_t = gi_ref[pl.ds(row, B), :]                                 # (B, 3*Hp)

        # Single fused hidden matmul for all three gates; W_hh_cat rows beyond
        # H are zero, so the padding lanes of h contribute nothing.
        gh = jnp.dot(h, whh_ref[...],
                     preferred_element_type=jnp.float32)                # (B, 3*Hp)

        # Tile-aligned (multiple-of-128) gate slices: free.
        r = jax.nn.sigmoid(gi_t[:, 0 * Hp:1 * Hp] + gh[:, 0 * Hp:1 * Hp])
        z = jax.nn.sigmoid(gi_t[:, 1 * Hp:2 * Hp] + gh[:, 1 * Hp:2 * Hp])
        n = jnp.tanh(gi_t[:, 2 * Hp:3 * Hp]
                     + r * (gh[:, 2 * Hp:3 * Hp] + bhn))

        # (1 - z) * n + z * h  ==  n + z * (h - n): one fewer VPU op on the
        # tail of the serial chain.
        h_new = n + z * (h - n)

        out_ref[t] = h_new[:, :H].astype(out_ref.dtype)
        return h_new

    h0 = jnp.zeros((B, Hp), jnp.float32)
    # Capped unroll: full unroll at small T (scheduler visibility across steps),
    # bounded instruction-memory growth for long sequences.
    h_last = jax.lax.fori_loop(0, T, step, h0, unroll=min(T, 8))

    hid_ref[0] = h_last[:, :H].astype(hid_ref.dtype)


def encoder_forward(x, w_ih, w_hh, b_ih, b_hh):
    """Pallas GRU encoder (matches PyTorch nn.GRU, 1 layer, unidirectional, h0=0).

    x    : (T, B, D)  float32
    w_ih : (3H, D)    float32   (PyTorch weight_ih_l0, gate order r, z, n)
    w_hh : (3H, H)    float32   (PyTorch weight_hh_l0)
    b_ih : (3H,)      float32
    b_hh : (3H,)      float32

    Returns (output, hidden): output (T, B, H), hidden (1, B, H).
    """
    T, B, D = x.shape
    H = w_hh.shape[1]
    Hp = ((H + 127) // 128) * 128          # per-gate lane-tile padding
    G = 3 * Hp

    # --- Host-side (wrapper) layout prep: all one-time, free XLA ops ----------
    x32 = jnp.asarray(x, jnp.float32)
    w_ih = jnp.asarray(w_ih, jnp.float32)
    w_hh = jnp.asarray(w_hh, jnp.float32)
    b_ih = jnp.asarray(b_ih, jnp.float32)
    b_hh = jnp.asarray(b_hh, jnp.float32)

    x2d = x32.reshape(T * B, D)                                         # (T*B, D)

    # Fused, 128-lane-per-gate padded RHS matrices.  Gate g's columns live at
    # lanes [g*Hp : g*Hp+H]; W_hh_cat rows beyond H are zero so the padded
    # hidden-state lanes never leak into the real lanes.
    # TODO(synk): optionally cast the packed weights / gi scratch to bfloat16
    # on v6e/v7x (keep preferred_element_type=f32) for narrower MXU streams.
    wih_cat = jnp.zeros((D, G), jnp.float32)
    whh_cat = jnp.zeros((Hp, G), jnp.float32)
    bi_cat = jnp.zeros((1, G), jnp.float32)
    bhn_pad = jnp.zeros((1, Hp), jnp.float32)
    for g in range(3):
        wih_cat = wih_cat.at[:, g * Hp:g * Hp + H].set(w_ih[g * H:(g + 1) * H, :].T)
        whh_cat = whh_cat.at[:H, g * Hp:g * Hp + H].set(w_hh[g * H:(g + 1) * H, :].T)
    # Fold b_hh_r / b_hh_z into the precomputed input projection; b_hh_n must
    # stay inside the r * (h @ W_hn^T + b_hn) term (PyTorch semantics).
    bi_cat = bi_cat.at[0, 0 * Hp:0 * Hp + H].set(b_ih[0:H] + b_hh[0:H])
    bi_cat = bi_cat.at[0, 1 * Hp:1 * Hp + H].set(b_ih[H:2 * H] + b_hh[H:2 * H])
    bi_cat = bi_cat.at[0, 2 * Hp:2 * Hp + H].set(b_ih[2 * H:3 * H])
    bhn_pad = bhn_pad.at[0, :H].set(b_hh[2 * H:3 * H])

    kernel = functools.partial(_gru_seq_kernel, T=T, B=B, D=D, H=H, Hp=Hp)

    # Advisory cost so XLA can overlap this latency-bound call with neighbors.
    flops = 2 * T * B * D * G + 2 * T * B * Hp * G + 12 * T * B * Hp
    transcendentals = 3 * T * B * Hp
    bytes_accessed = 4 * (T * B * D + D * G + Hp * G + G + Hp
                          + 2 * T * B * G + T * B * H + B * H)

    output, hidden = pl.pallas_call(
        kernel,
        out_shape=(
            jax.ShapeDtypeStruct((T, B, H), jnp.float32),
            jax.ShapeDtypeStruct((1, B, H), jnp.float32),
        ),
        in_specs=[pl.BlockSpec(memory_space=pltpu.MemorySpace.VMEM)] * 5,
        out_specs=(
            pl.BlockSpec(memory_space=pltpu.MemorySpace.VMEM),
            pl.BlockSpec(memory_space=pltpu.MemorySpace.VMEM),
        ),
        scratch_shapes=[
            pltpu.VMEM((T * B, G), jnp.float32),   # fused input proj, all steps
        ],
        compiler_params=pltpu.CompilerParams(
            vmem_limit_bytes=32 * 1024 * 1024,
        ),
        cost_estimate=pl.CostEstimate(
            flops=flops,
            transcendentals=transcendentals,
            bytes_accessed=bytes_accessed,
        ),
    )(x2d, wih_cat, whh_cat, bi_cat, bhn_pad)

    # TODO(synk): for large B on v7x, add a leading batch grid axis marked
    # "parallel" (or pl.core_map over create_tensorcore_mesh) so the two
    # TensorCores each run an independent GRU over half the batch; for long T,
    # chunk the time axis so the gi scratch stays within the 64 MiB v7x VMEM.
    return output, hidden


def _reference_gru(x, w_ih, w_hh, b_ih, b_hh):
    """Pure-JAX reference of PyTorch nn.GRU (1 layer, unidirectional, h0=0)."""
    T, B, D = x.shape
    H = w_hh.shape[1]

    def step(h, x_t):
        gi = x_t @ w_ih.T + b_ih
        gh = h @ w_hh.T + b_hh
        i_r, i_z, i_n = gi[:, :H], gi[:, H:2 * H], gi[:, 2 * H:]
        h_r, h_z, h_n = gh[:, :H], gh[:, H:2 * H], gh[:, 2 * H:]
        r = jax.nn.sigmoid(i_r + h_r)
        z = jax.nn.sigmoid(i_z + h_z)
        n = jnp.tanh(i_n + r * h_n)
        h_new = (1.0 - z) * n + z * h
        return h_new, h_new

    h0 = jnp.zeros((B, H), jnp.float32)
    h_last, ys = jax.lax.scan(step, h0, x)
    return ys, h_last[None]


if __name__ == "__main__":
    # Small shapes consistent with the module: seq=8, batch=8, input_dim=16, hidden=32.
    T, B, D, H = 8, 8, 16, 32

    key = jax.random.PRNGKey(0)
    k_x, k_wih, k_whh, k_bih, k_bhh = jax.random.split(key, 5)

    # Deterministic init matching PyTorch GRU's U(-1/sqrt(H), 1/sqrt(H)).
    bound = 1.0 / (H ** 0.5)
    x = jax.random.normal(k_x, (T, B, D), jnp.float32)
    w_ih = jax.random.uniform(k_wih, (3 * H, D), jnp.float32, -bound, bound)
    w_hh = jax.random.uniform(k_whh, (3 * H, H), jnp.float32, -bound, bound)
    b_ih = jax.random.uniform(k_bih, (3 * H,), jnp.float32, -bound, bound)
    b_hh = jax.random.uniform(k_bhh, (3 * H,), jnp.float32, -bound, bound)

    output, hidden = encoder_forward(x, w_ih, w_hh, b_ih, b_hh)
    jax.block_until_ready((output, hidden))

    # Correctness check against pure-JAX reference of the PyTorch semantics.
    ref_out, ref_hid = _reference_gru(x, w_ih, w_hh, b_ih, b_hh)
    assert output.shape == (T, B, H)
    assert hidden.shape == (1, B, H)
    assert jnp.allclose(output, ref_out, atol=1e-5, rtol=1e-5)
    assert jnp.allclose(hidden, ref_hid, atol=1e-5, rtol=1e-5)

    print("KERNEL_OK")
</pallas_src>

<mosaic_0001>
module attributes {stable_mosaic.version = 11 : i64} {
  func.func @_gru_seq_kernel(%arg0: memref<64x16xf32, #tpu.memory_space<vmem>>, %arg1: memref<16x384xf32, #tpu.memory_space<vmem>>, %arg2: memref<128x384xf32, #tpu.memory_space<vmem>>, %arg3: memref<1x384xf32, #tpu.memory_space<vmem>>, %arg4: memref<1x128xf32, #tpu.memory_space<vmem>>, %arg5: memref<8x8x32xf32, #tpu.memory_space<vmem>>, %arg6: memref<1x8x32xf32, #tpu.memory_space<vmem>>, %arg7: memref<64x384xf32, #tpu.memory_space<vmem>>) attributes {dimension_semantics = [], scalar_prefetch = 0 : i64, scratch_operands = 1 : i64, tpu.core_type = #tpu.core_type<tc>} {
    %c0 = arith.constant 0 : index
    %c0_0 = arith.constant 0 : index
    %0 = vector.load %arg0[%c0, %c0_0] : memref<64x16xf32, #tpu.memory_space<vmem>>, vector<64x16xf32>
    %c0_1 = arith.constant 0 : index
    %c0_2 = arith.constant 0 : index
    %1 = vector.load %arg1[%c0_1, %c0_2] : memref<16x384xf32, #tpu.memory_space<vmem>>, vector<16x384xf32>
    %cst = arith.constant dense<0.000000e+00> : vector<64x384xf32>
    %2 = tpu.matmul %0, %1, %cst {dimension_numbers = #tpu.dot_dimension_numbers<[1], [0], [0], [1], [0, 0, 1, 1], [], []>} : vector<64x16xf32>, vector<16x384xf32>, vector<64x384xf32> -> vector<64x384xf32>
    %c0_3 = arith.constant 0 : index
    %c0_4 = arith.constant 0 : index
    %3 = vector.load %arg3[%c0_3, %c0_4] : memref<1x384xf32, #tpu.memory_space<vmem>>, vector<1x384xf32>
    %4 = vector.broadcast %3 : vector<1x384xf32> to vector<64x384xf32>
    %5 = arith.addf %2, %4 : vector<64x384xf32>
    %c0_5 = arith.constant 0 : index
    %c0_6 = arith.constant 0 : index
    %6 = vector.load %arg7[%c0_5, %c0_6] : memref<64x384xf32, #tpu.memory_space<vmem>>, vector<64x384xf32>
    tpu.vector_store %arg7[%c0_5, %c0_6], %5 {strides = array<i32>} : memref<64x384xf32, #tpu.memory_space<vmem>>, vector<64x384xf32>,
    %c0_7 = arith.constant 0 : index
    %c0_8 = arith.constant 0 : index
    %7 = vector.load %arg4[%c0_7, %c0_8] : memref<1x128xf32, #tpu.memory_space<vmem>>, vector<1x128xf32>
    %8 = vector.shape_cast %7 : vector<1x128xf32> to vector<1x128xf32>
    %9 = vector.broadcast %8 : vector<1x128xf32> to vector<8x128xf32>
    %cst_9 = arith.constant 0.000000e+00 : f32
    %10 = vector.broadcast %cst_9 : f32 to vector<8x128xf32>
    %c0_i32 = arith.constant 0 : i32
    %c8_i32 = arith.constant 8 : i32
    %11 = arith.muli %c0_i32, %c8_i32 : i32
    %12 = tpu.assume_multiple %11, 8 : i32
    %13 = arith.index_cast %12 : i32 to index
    %c0_10 = arith.constant 0 : index
    %14 = vector.load %arg7[%13, %c0_10] : memref<64x384xf32, #tpu.memory_space<vmem>>, vector<8x384xf32>
    %c0_11 = arith.constant 0 : index
    %c0_12 = arith.constant 0 : index
    %15 = vector.load %arg2[%c0_11, %c0_12] : memref<128x384xf32, #tpu.memory_space<vmem>>, vector<128x384xf32>
    %cst_13 = arith.constant dense<0.000000e+00> : vector<8x384xf32>
    %16 = tpu.matmul %10, %15, %cst_13 {dimension_numbers = #tpu.dot_dimension_numbers<[1], [0], [0], [1], [0, 0, 1, 1], [], []>} : vector<8x128xf32>, vector<128x384xf32>, vector<8x384xf32> -> vector<8x384xf32>
    %17 = vector.extract_strided_slice %14 {offsets = [0, 0], sizes = [8, 128], strides = [1, 1]} : vector<8x384xf32> to vector<8x128xf32>
    %18 = vector.extract_strided_slice %16 {offsets = [0, 0], sizes = [8, 128], strides = [1, 1]} : vector<8x384xf32> to vector<8x128xf32>
    %19 = arith.addf %17, %18 : vector<8x128xf32>
    %20 = arith.negf %19 : vector<8x128xf32>
    %21 = math.exp %20 : vector<8x128xf32>
    %cst_14 = arith.constant 1.000000e+00 : f32
    %22 = vector.broadcast %cst_14 : f32 to vector<8x128xf32>
    %23 = arith.addf %22, %21 : vector<8x128xf32>
    %24 = arith.divf %22, %23 : vector<8x128xf32>
    %25 = vector.extract_strided_slice %14 {offsets = [0, 128], sizes = [8, 128], strides = [1, 1]} : vector<8x384xf32> to vector<8x128xf32>
    %26 = vector.extract_strided_slice %16 {offsets = [0, 128], sizes = [8, 128], strides = [1, 1]} : vector<8x384xf32> to vector<8x128xf32>
    %27 = arith.addf %25, %26 : vector<8x128xf32>
    %28 = arith.negf %27 : vector<8x128xf32>
    %29 = math.exp %28 : vector<8x128xf32>
    %cst_15 = arith.constant 1.000000e+00 : f32
    %30 = vector.broadcast %cst_15 : f32 to vector<8x128xf32>
    %31 = arith.addf %30, %29 : vector<8x128xf32>
    %32 = arith.divf %30, %31 : vector<8x128xf32>
    %33 = vector.extract_strided_slice %14 {offsets = [0, 256], sizes = [8, 128], strides = [1, 1]} : vector<8x384xf32> to vector<8x128xf32>
    %34 = vector.extract_strided_slice %16 {offsets = [0, 256], sizes = [8, 128], strides = [1, 1]} : vector<8x384xf32> to vector<8x128xf32>
    %35 = arith.addf %34, %9 : vector<8x128xf32>
    %36 = arith.mulf %24, %35 : vector<8x128xf32>
    %37 = arith.addf %33, %36 : vector<8x128xf32>
    %38 = math.tanh %37 : vector<8x128xf32>
    %39 = arith.subf %10, %38 : vector<8x128xf32>
    %40 = arith.mulf %32, %39 : vector<8x128xf32>
    %41 = arith.addf %38, %40 : vector<8x128xf32>
    %42 = vector.extract_strided_slice %41 {offsets = [0, 0], sizes = [8, 32], strides = [1, 1]} : vector<8x128xf32> to vector<8x32xf32>
    %43 = arith.index_cast %c0_i32 : i32 to index
    %c0_16 = arith.constant 0 : index
    %c0_17 = arith.constant 0 : index
    %44 = vector.load %arg5[%43, %c0_16, %c0_17] : memref<8x8x32xf32, #tpu.memory_space<vmem>>, vector<1x8x32xf32>
    %45 = vector.shape_cast %44 : vector<1x8x32xf32> to vector<8x32xf32>
    %46 = vector.shape_cast %42 : vector<8x32xf32> to vector<1x8x32xf32>
    tpu.vector_store %arg5[%43, %c0_16, %c0_17], %46 {strides = array<i32>} : memref<8x8x32xf32, #tpu.memory_space<vmem>>, vector<1x8x32xf32>,
    %c1_i32 = arith.constant 1 : i32
    %c8_i32_18 = arith.constant 8 : i32
    %47 = arith.muli %c1_i32, %c8_i32_18 : i32
    %48 = tpu.assume_multiple %47, 8 : i32
    %49 = arith.index_cast %48 : i32 to index
    %c0_19 = arith.constant 0 : index
    %50 = vector.load %arg7[%49, %c0_19] : memref<64x384xf32, #tpu.memory_space<vmem>>, vector<8x384xf32>
    %c0_20 = arith.constant 0 : index
    %c0_21 = arith.constant 0 : index
    %51 = vector.load %arg2[%c0_20, %c0_21] : memref<128x384xf32, #tpu.memory_space<vmem>>, vector<128x384xf32>
    %cst_22 = arith.constant dense<0.000000e+00> : vector<8x384xf32>
    %52 = tpu.matmul %41, %51, %cst_22 {dimension_numbers = #tpu.dot_dimension_numbers<[1], [0], [0], [1], [0, 0, 1, 1], [], []>} : vector<8x128xf32>, vector<128x384xf32>, vector<8x384xf32> -> vector<8x384xf32>
    %53 = vector.extract_strided_slice %50 {offsets = [0, 0], sizes = [8, 128], strides = [1, 1]} : vector<8x384xf32> to vector<8x128xf32>
    %54 = vector.extract_strided_slice %52 {offsets = [0, 0], sizes = [8, 128], strides = [1, 1]} : vector<8x384xf32> to vector<8x128xf32>
    %55 = arith.addf %53, %54 : vector<8x128xf32>
    %56 = arith.negf %55 : vector<8x128xf32>
    %57 = math.exp %56 : vector<8x128xf32>
    %cst_23 = arith.constant 1.000000e+00 : f32
    %58 = vector.broadcast %cst_23 : f32 to vector<8x128xf32>
    %59 = arith.addf %58, %57 : vector<8x128xf32>
    %60 = arith.divf %58, %59 : vector<8x128xf32>
    %61 = vector.extract_strided_slice %50 {offsets = [0, 128], sizes = [8, 128], strides = [1, 1]} : vector<8x384xf32> to vector<8x128xf32>
    %62 = vector.extract_strided_slice %52 {offsets = [0, 128], sizes = [8, 128], strides = [1, 1]} : vector<8x384xf32> to vector<8x128xf32>
    %63 = arith.addf %61, %62 : vector<8x128xf32>
    %64 = arith.negf %63 : vector<8x128xf32>
    %65 = math.exp %64 : vector<8x128xf32>
    %cst_24 = arith.constant 1.000000e+00 : f32
    %66 = vector.broadcast %cst_24 : f32 to vector<8x128xf32>
    %67 = arith.addf %66, %65 : vector<8x128xf32>
    %68 = arith.divf %66, %67 : vector<8x128xf32>
    %69 = vector.extract_strided_slice %50 {offsets = [0, 256], sizes = [8, 128], strides = [1, 1]} : vector<8x384xf32> to vector<8x128xf32>
    %70 = vector.extract_strided_slice %52 {offsets = [0, 256], sizes = [8, 128], strides = [1, 1]} : vector<8x384xf32> to vector<8x128xf32>
    %71 = arith.addf %70, %9 : vector<8x128xf32>
    %72 = arith.mulf %60, %71 : vector<8x128xf32>
    %73 = arith.addf %69, %72 : vector<8x128xf32>
    %74 = math.tanh %73 : vector<8x128xf32>
    %75 = arith.subf %41, %74 : vector<8x128xf32>
    %76 = arith.mulf %68, %75 : vector<8x128xf32>
    %77 = arith.addf %74, %76 : vector<8x128xf32>
    %78 = vector.extract_strided_slice %77 {offsets = [0, 0], sizes = [8, 32], strides = [1, 1]} : vector<8x128xf32> to vector<8x32xf32>
    %79 = arith.index_cast %c1_i32 : i32 to index
    %c0_25 = arith.constant 0 : index
    %c0_26 = arith.constant 0 : index
    %80 = vector.load %arg5[%79, %c0_25, %c0_26] : memref<8x8x32xf32, #tpu.memory_space<vmem>>, vector<1x8x32xf32>
    %81 = vector.shape_cast %80 : vector<1x8x32xf32> to vector<8x32xf32>
    %82 = vector.shape_cast %78 : vector<8x32xf32> to vector<1x8x32xf32>
    tpu.vector_store %arg5[%79, %c0_25, %c0_26], %82 {strides = array<i32>} : memref<8x8x32xf32, #tpu.memory_space<vmem>>, vector<1x8x32xf32>,
    %c2_i32 = arith.constant 2 : i32
    %c8_i32_27 = arith.constant 8 : i32
    %83 = arith.muli %c2_i32, %c8_i32_27 : i32
    %84 = tpu.assume_multiple %83, 8 : i32
    %85 = arith.index_cast %84 : i32 to index
    %c0_28 = arith.constant 0 : index
    %86 = vector.load %arg7[%85, %c0_28] : memref<64x384xf32, #tpu.memory_space<vmem>>, vector<8x384xf32>
    %c0_29 = arith.constant 0 : index
    %c0_30 = arith.constant 0 : index
    %87 = vector.load %arg2[%c0_29, %c0_30] : memref<128x384xf32, #tpu.memory_space<vmem>>, vector<128x384xf32>
    %cst_31 = arith.constant dense<0.000000e+00> : vector<8x384xf32>
    %88 = tpu.matmul %77, %87, %cst_31 {dimension_numbers = #tpu.dot_dimension_numbers<[1], [0], [0], [1], [0, 0, 1, 1], [], []>} : vector<8x128xf32>, vector<128x384xf32>, vector<8x384xf32> -> vector<8x384xf32>
    %89 = vector.extract_strided_slice %86 {offsets = [0, 0], sizes = [8, 128], strides = [1, 1]} : vector<8x384xf32> to vector<8x128xf32>
    %90 = vector.extract_strided_slice %88 {offsets = [0, 0], sizes = [8, 128], strides = [1, 1]} : vector<8x384xf32> to vector<8x128xf32>
    %91 = arith.addf %89, %90 : vector<8x128xf32>
    %92 = arith.negf %91 : vector<8x128xf32>
    %93 = math.exp %92 : vector<8x128xf32>
    %cst_32 = arith.constant 1.000000e+00 : f32
    %94 = vector.broadcast %cst_32 : f32 to vector<8x128xf32>
    %95 = arith.addf %94, %93 : vector<8x128xf32>
    %96 = arith.divf %94, %95 : vector<8x128xf32>
    %97 = vector.extract_strided_slice %86 {offsets = [0, 128], sizes = [8, 128], strides = [1, 1]} : vector<8x384xf32> to vector<8x128xf32>
    %98 = vector.extract_strided_slice %88 {offsets = [0, 128], sizes = [8, 128], strides = [1, 1]} : vector<8x384xf32> to vector<8x128xf32>
    %99 = arith.addf %97, %98 : vector<8x128xf32>
    %100 = arith.negf %99 : vector<8x128xf32>
    %101 = math.exp %100 : vector<8x128xf32>
    %cst_33 = arith.constant 1.000000e+00 : f32
    %102 = vector.broadcast %cst_33 : f32 to vector<8x128xf32>
    %103 = arith.addf %102, %101 : vector<8x128xf32>
    %104 = arith.divf %102, %103 : vector<8x128xf32>
    %105 = vector.extract_strided_slice %86 {offsets = [0, 256], sizes = [8, 128], strides = [1, 1]} : vector<8x384xf32> to vector<8x128xf32>
    %106 = vector.extract_strided_slice %88 {offsets = [0, 256], sizes = [8, 128], strides = [1, 1]} : vector<8x384xf32> to vector<8x128xf32>
    %107 = arith.addf %106, %9 : vector<8x128xf32>
    %108 = arith.mulf %96, %107 : vector<8x128xf32>
    %109 = arith.addf %105, %108 : vector<8x128xf32>
    %110 = math.tanh %109 : vector<8x128xf32>
    %111 = arith.subf %77, %110 : vector<8x128xf32>
    %112 = arith.mulf %104, %111 : vector<8x128xf32>
    %113 = arith.addf %110, %112 : vector<8x128xf32>
    %114 = vector.extract_strided_slice %113 {offsets = [0, 0], sizes = [8, 32], strides = [1, 1]} : vector<8x128xf32> to vector<8x32xf32>
    %115 = arith.index_cast %c2_i32 : i32 to index
    %c0_34 = arith.constant 0 : index
    %c0_35 = arith.constant 0 : index
    %116 = vector.load %arg5[%115, %c0_34, %c0_35] : memref<8x8x32xf32, #tpu.memory_space<vmem>>, vector<1x8x32xf32>
    %117 = vector.shape_cast %116 : vector<1x8x32xf32> to vector<8x32xf32>
    %118 = vector.shape_cast %114 : vector<8x32xf32> to vector<1x8x32xf32>
    tpu.vector_store %arg5[%115, %c0_34, %c0_35], %118 {strides = array<i32>} : memref<8x8x32xf32, #tpu.memory_space<vmem>>, vector<1x8x32xf32>,
    %c3_i32 = arith.constant 3 : i32
    %c8_i32_36 = arith.constant 8 : i32
    %119 = arith.muli %c3_i32, %c8_i32_36 : i32
    %120 = tpu.assume_multiple %119, 8 : i32
    %121 = arith.index_cast %120 : i32 to index
    %c0_37 = arith.constant 0 : index
    %122 = vector.load %arg7[%121, %c0_37] : memref<64x384xf32, #tpu.memory_space<vmem>>, vector<8x384xf32>
    %c0_38 = arith.constant 0 : index
    %c0_39 = arith.constant 0 : index
    %123 = vector.load %arg2[%c0_38, %c0_39] : memref<128x384xf32, #tpu.memory_space<vmem>>, vector<128x384xf32>
    %cst_40 = arith.constant dense<0.000000e+00> : vector<8x384xf32>
    %124 = tpu.matmul %113, %123, %cst_40 {dimension_numbers = #tpu.dot_dimension_numbers<[1], [0], [0], [1], [0, 0, 1, 1], [], []>} : vector<8x128xf32>, vector<128x384xf32>, vector<8x384xf32> -> vector<8x384xf32>
    %125 = vector.extract_strided_slice %122 {offsets = [0, 0], sizes = [8, 128], strides = [1, 1]} : vector<8x384xf32> to vector<8x128xf32>
    %126 = vector.extract_strided_slice %124 {offsets = [0, 0], sizes = [8, 128], strides = [1, 1]} : vector<8x384xf32> to vector<8x128xf32>
    %127 = arith.addf %125, %126 : vector<8x128xf32>
    %128 = arith.negf %127 : vector<8x128xf32>
    %129 = math.exp %128 : vector<8x128xf32>
    %cst_41 = arith.constant 1.000000e+00 : f32
    %130 = vector.broadcast %cst_41 : f32 to vector<8x128xf32>
    %131 = arith.addf %130, %129 : vector<8x128xf32>
    %132 = arith.divf %130, %131 : vector<8x128xf32>
    %133 = vector.extract_strided_slice %122 {offsets = [0, 128], sizes = [8, 128], strides = [1, 1]} : vector<8x384xf32> to vector<8x128xf32>
    %134 = vector.extract_strided_slice %124 {offsets = [0, 128], sizes = [8, 128], strides = [1, 1]} : vector<8x384xf32> to vector<8x128xf32>
    %135 = arith.addf %133, %134 : vector<8x128xf32>
    %136 = arith.negf %135 : vector<8x128xf32>
    %137 = math.exp %136 : vector<8x128xf32>
    %cst_42 = arith.constant 1.000000e+00 : f32
    %138 = vector.broadcast %cst_42 : f32 to vector<8x128xf32>
    %139 = arith.addf %138, %137 : vector<8x128xf32>
    %140 = arith.divf %138, %139 : vector<8x128xf32>
    %141 = vector.extract_strided_slice %122 {offsets = [0, 256], sizes = [8, 128], strides = [1, 1]} : vector<8x384xf32> to vector<8x128xf32>
    %142 = vector.extract_strided_slice %124 {offsets = [0, 256], sizes = [8, 128], strides = [1, 1]} : vector<8x384xf32> to vector<8x128xf32>
    %143 = arith.addf %142, %9 : vector<8x128xf32>
    %144 = arith.mulf %132, %143 : vector<8x128xf32>
    %145 = arith.addf %141, %144 : vector<8x128xf32>
    %146 = math.tanh %145 : vector<8x128xf32>
    %147 = arith.subf %113, %146 : vector<8x128xf32>
    %148 = arith.mulf %140, %147 : vector<8x128xf32>
    %149 = arith.addf %146, %148 : vector<8x128xf32>
    %150 = vector.extract_strided_slice %149 {offsets = [0, 0], sizes = [8, 32], strides = [1, 1]} : vector<8x128xf32> to vector<8x32xf32>
    %151 = arith.index_cast %c3_i32 : i32 to index
    %c0_43 = arith.constant 0 : index
    %c0_44 = arith.constant 0 : index
    %152 = vector.load %arg5[%151, %c0_43, %c0_44] : memref<8x8x32xf32, #tpu.memory_space<vmem>>, vector<1x8x32xf32>
    %153 = vector.shape_cast %152 : vector<1x8x32xf32> to vector<8x32xf32>
    %154 = vector.shape_cast %150 : vector<8x32xf32> to vector<1x8x32xf32>
    tpu.vector_store %arg5[%151, %c0_43, %c0_44], %154 {strides = array<i32>} : memref<8x8x32xf32, #tpu.memory_space<vmem>>, vector<1x8x32xf32>,
    %c4_i32 = arith.constant 4 : i32
    %c8_i32_45 = arith.constant 8 : i32
    %155 = arith.muli %c4_i32, %c8_i32_45 : i32
    %156 = tpu.assume_multiple %155, 8 : i32
    %157 = arith.index_cast %156 : i32 to index
    %c0_46 = arith.constant 0 : index
    %158 = vector.load %arg7[%157, %c0_46] : memref<64x384xf32, #tpu.memory_space<vmem>>, vector<8x384xf32>
    %c0_47 = arith.constant 0 : index
    %c0_48 = arith.constant 0 : index
    %159 = vector.load %arg2[%c0_47, %c0_48] : memref<128x384xf32, #tpu.memory_space<vmem>>, vector<128x384xf32>
    %cst_49 = arith.constant dense<0.000000e+00> : vector<8x384xf32>
    %160 = tpu.matmul %149, %159, %cst_49 {dimension_numbers = #tpu.dot_dimension_numbers<[1], [0], [0], [1], [0, 0, 1, 1], [], []>} : vector<8x128xf32>, vector<128x384xf32>, vector<8x384xf32> -> vector<8x384xf32>
    %161 = vector.extract_strided_slice %158 {offsets = [0, 0], sizes = [8, 128], strides = [1, 1]} : vector<8x384xf32> to vector<8x128xf32>
    %162 = vector.extract_strided_slice %160 {offsets = [0, 0], sizes = [8, 128], strides = [1, 1]} : vector<8x384xf32> to vector<8x128xf32>
    %163 = arith.addf %161, %162 : vector<8x128xf32>
    %164 = arith.negf %163 : vector<8x128xf32>
    %165 = math.exp %164 : vector<8x128xf32>
    %cst_50 = arith.constant 1.000000e+00 : f32
    %166 = vector.broadcast %cst_50 : f32 to vector<8x128xf32>
    %167 = arith.addf %166, %165 : vector<8x128xf32>
    %168 = arith.divf %166, %167 : vector<8x128xf32>
    %169 = vector.extract_strided_slice %158 {offsets = [0, 128], sizes = [8, 128], strides = [1, 1]} : vector<8x384xf32> to vector<8x128xf32>
    %170 = vector.extract_strided_slice %160 {offsets = [0, 128], sizes = [8, 128], strides = [1, 1]} : vector<8x384xf32> to vector<8x128xf32>
    %171 = arith.addf %169, %170 : vector<8x128xf32>
    %172 = arith.negf %171 : vector<8x128xf32>
    %173 = math.exp %172 : vector<8x128xf32>
    %cst_51 = arith.constant 1.000000e+00 : f32
    %174 = vector.broadcast %cst_51 : f32 to vector<8x128xf32>
    %175 = arith.addf %174, %173 : vector<8x128xf32>
    %176 = arith.divf %174, %175 : vector<8x128xf32>
    %177 = vector.extract_strided_slice %158 {offsets = [0, 256], sizes = [8, 128], strides = [1, 1]} : vector<8x384xf32> to vector<8x128xf32>
    %178 = vector.extract_strided_slice %160 {offsets = [0, 256], sizes = [8, 128], strides = [1, 1]} : vector<8x384xf32> to vector<8x128xf32>
    %179 = arith.addf %178, %9 : vector<8x128xf32>
    %180 = arith.mulf %168, %179 : vector<8x128xf32>
    %181 = arith.addf %177, %180 : vector<8x128xf32>
    %182 = math.tanh %181 : vector<8x128xf32>
    %183 = arith.subf %149, %182 : vector<8x128xf32>
    %184 = arith.mulf %176, %183 : vector<8x128xf32>
    %185 = arith.addf %182, %184 : vector<8x128xf32>
    %186 = vector.extract_strided_slice %185 {offsets = [0, 0], sizes = [8, 32], strides = [1, 1]} : vector<8x128xf32> to vector<8x32xf32>
    %187 = arith.index_cast %c4_i32 : i32 to index
    %c0_52 = arith.constant 0 : index
    %c0_53 = arith.constant 0 : index
    %188 = vector.load %arg5[%187, %c0_52, %c0_53] : memref<8x8x32xf32, #tpu.memory_space<vmem>>, vector<1x8x32xf32>
    %189 = vector.shape_cast %188 : vector<1x8x32xf32> to vector<8x32xf32>
    %190 = vector.shape_cast %186 : vector<8x32xf32> to vector<1x8x32xf32>
    tpu.vector_store %arg5[%187, %c0_52, %c0_53], %190 {strides = array<i32>} : memref<8x8x32xf32, #tpu.memory_space<vmem>>, vector<1x8x32xf32>,
    %c5_i32 = arith.constant 5 : i32
    %c8_i32_54 = arith.constant 8 : i32
    %191 = arith.muli %c5_i32, %c8_i32_54 : i32
    %192 = tpu.assume_multiple %191, 8 : i32
    %193 = arith.index_cast %192 : i32 to index
    %c0_55 = arith.constant 0 : index
    %194 = vector.load %arg7[%193, %c0_55] : memref<64x384xf32, #tpu.memory_space<vmem>>, vector<8x384xf32>
    %c0_56 = arith.constant 0 : index
    %c0_57 = arith.constant 0 : index
    %195 = vector.load %arg2[%c0_56, %c0_57] : memref<128x384xf32, #tpu.memory_space<vmem>>, vector<128x384xf32>
    %cst_58 = arith.constant dense<0.000000e+00> : vector<8x384xf32>
    %196 = tpu.matmul %185, %195, %cst_58 {dimension_numbers = #tpu.dot_dimension_numbers<[1], [0], [0], [1], [0, 0, 1, 1], [], []>} : vector<8x128xf32>, vector<128x384xf32>, vector<8x384xf32> -> vector<8x384xf32>
    %197 = vector.extract_strided_slice %194 {offsets = [0, 0], sizes = [8, 128], strides = [1, 1]} : vector<8x384xf32> to vector<8x128xf32>
    %198 = vector.extract_strided_slice %196 {offsets = [0, 0], sizes = [8, 128], strides = [1, 1]} : vector<8x384xf32> to vector<8x128xf32>
    %199 = arith.addf %197, %198 : vector<8x128xf32>
    %200 = arith.negf %199 : vector<8x128xf32>
    %201 = math.exp %200 : vector<8x128xf32>
    %cst_59 = arith.constant 1.000000e+00 : f32
    %202 = vector.broadcast %cst_59 : f32 to vector<8x128xf32>
    %203 = arith.addf %202, %201 : vector<8x128xf32>
    %204 = arith.divf %202, %203 : vector<8x128xf32>
    %205 = vector.extract_strided_slice %194 {offsets = [0, 128], sizes = [8, 128], strides = [1, 1]} : vector<8x384xf32> to vector<8x128xf32>
    %206 = vector.extract_strided_slice %196 {offsets = [0, 128], sizes = [8, 128], strides = [1, 1]} : vector<8x384xf32> to vector<8x128xf32>
    %207 = arith.addf %205, %206 : vector<8x128xf32>
    %208 = arith.negf %207 : vector<8x128xf32>
    %209 = math.exp %208 : vector<8x128xf32>
    %cst_60 = arith.constant 1.000000e+00 : f32
    %210 = vector.broadcast %cst_60 : f32 to vector<8x128xf32>
    %211 = arith.addf %210, %209 : vector<8x128xf32>
    %212 = arith.divf %210, %211 : vector<8x128xf32>
    %213 = vector.extract_strided_slice %194 {offsets = [0, 256], sizes = [8, 128], strides = [1, 1]} : vector<8x384xf32> to vector<8x128xf32>
    %214 = vector.extract_strided_slice %196 {offsets = [0, 256], sizes = [8, 128], strides = [1, 1]} : vector<8x384xf32> to vector<8x128xf32>
    %215 = arith.addf %214, %9 : vector<8x128xf32>
    %216 = arith.mulf %204, %215 : vector<8x128xf32>
    %217 = arith.addf %213, %216 : vector<8x128xf32>
    %218 = math.tanh %217 : vector<8x128xf32>
    %219 = arith.subf %185, %218 : vector<8x128xf32>
    %220 = arith.mulf %212, %219 : vector<8x128xf32>
    %221 = arith.addf %218, %220 : vector<8x128xf32>
    %222 = vector.extract_strided_slice %221 {offsets = [0, 0], sizes = [8, 32], strides = [1, 1]} : vector<8x128xf32> to vector<8x32xf32>
    %223 = arith.index_cast %c5_i32 : i32 to index
    %c0_61 = arith.constant 0 : index
    %c0_62 = arith.constant 0 : index
    %224 = vector.load %arg5[%223, %c0_61, %c0_62] : memref<8x8x32xf32, #tpu.memory_space<vmem>>, vector<1x8x32xf32>
    %225 = vector.shape_cast %224 : vector<1x8x32xf32> to vector<8x32xf32>
    %226 = vector.shape_cast %222 : vector<8x32xf32> to vector<1x8x32xf32>
    tpu.vector_store %arg5[%223, %c0_61, %c0_62], %226 {strides = array<i32>} : memref<8x8x32xf32, #tpu.memory_space<vmem>>, vector<1x8x32xf32>,
    %c6_i32 = arith.constant 6 : i32
    %c8_i32_63 = arith.constant 8 : i32
    %227 = arith.muli %c6_i32, %c8_i32_63 : i32
    %228 = tpu.assume_multiple %227, 8 : i32
    %229 = arith.index_cast %228 : i32 to index
    %c0_64 = arith.constant 0 : index
    %230 = vector.load %arg7[%229, %c0_64] : memref<64x384xf32, #tpu.memory_space<vmem>>, vector<8x384xf32>
    %c0_65 = arith.constant 0 : index
    %c0_66 = arith.constant 0 : index
    %231 = vector.load %arg2[%c0_65, %c0_66] : memref<128x384xf32, #tpu.memory_space<vmem>>, vector<128x384xf32>
    %cst_67 = arith.constant dense<0.000000e+00> : vector<8x384xf32>
    %232 = tpu.matmul %221, %231, %cst_67 {dimension_numbers = #tpu.dot_dimension_numbers<[1], [0], [0], [1], [0, 0, 1, 1], [], []>} : vector<8x128xf32>, vector<128x384xf32>, vector<8x384xf32> -> vector<8x384xf32>
    %233 = vector.extract_strided_slice %230 {offsets = [0, 0], sizes = [8, 128], strides = [1, 1]} : vector<8x384xf32> to vector<8x128xf32>
    %234 = vector.extract_strided_slice %232 {offsets = [0, 0], sizes = [8, 128], strides = [1, 1]} : vector<8x384xf32> to vector<8x128xf32>
    %235 = arith.addf %233, %234 : vector<8x128xf32>
    %236 = arith.negf %235 : vector<8x128xf32>
    %237 = math.exp %236 : vector<8x128xf32>
    %cst_68 = arith.constant 1.000000e+00 : f32
    %238 = vector.broadcast %cst_68 : f32 to vector<8x128xf32>
    %239 = arith.addf %238, %237 : vector<8x128xf32>
    %240 = arith.divf %238, %239 : vector<8x128xf32>
    %241 = vector.extract_strided_slice %230 {offsets = [0, 128], sizes = [8, 128], strides = [1, 1]} : vector<8x384xf32> to vector<8x128xf32>
    %242 = vector.extract_strided_slice %232 {offsets = [0, 128], sizes = [8, 128], strides = [1, 1]} : vector<8x384xf32> to vector<8x128xf32>
    %243 = arith.addf %241, %242 : vector<8x128xf32>
    %244 = arith.negf %243 : vector<8x128xf32>
    %245 = math.exp %244 : vector<8x128xf32>
    %cst_69 = arith.constant 1.000000e+00 : f32
    %246 = vector.broadcast %cst_69 : f32 to vector<8x128xf32>
    %247 = arith.addf %246, %245 : vector<8x128xf32>
    %248 = arith.divf %246, %247 : vector<8x128xf32>
    %249 = vector.extract_strided_slice %230 {offsets = [0, 256], sizes = [8, 128], strides = [1, 1]} : vector<8x384xf32> to vector<8x128xf32>
    %250 = vector.extract_strided_slice %232 {offsets = [0, 256], sizes = [8, 128], strides = [1, 1]} : vector<8x384xf32> to vector<8x128xf32>
    %251 = arith.addf %250, %9 : vector<8x128xf32>
    %252 = arith.mulf %240, %251 : vector<8x128xf32>
    %253 = arith.addf %249, %252 : vector<8x128xf32>
    %254 = math.tanh %253 : vector<8x128xf32>
    %255 = arith.subf %221, %254 : vector<8x128xf32>
    %256 = arith.mulf %248, %255 : vector<8x128xf32>
    %257 = arith.addf %254, %256 : vector<8x128xf32>
    %258 = vector.extract_strided_slice %257 {offsets = [0, 0], sizes = [8, 32], strides = [1, 1]} : vector<8x128xf32> to vector<8x32xf32>
    %259 = arith.index_cast %c6_i32 : i32 to index
    %c0_70 = arith.constant 0 : index
    %c0_71 = arith.constant 0 : index
    %260 = vector.load %arg5[%259, %c0_70, %c0_71] : memref<8x8x32xf32, #tpu.memory_space<vmem>>, vector<1x8x32xf32>
    %261 = vector.shape_cast %260 : vector<1x8x32xf32> to vector<8x32xf32>
    %262 = vector.shape_cast %258 : vector<8x32xf32> to vector<1x8x32xf32>
    tpu.vector_store %arg5[%259, %c0_70, %c0_71], %262 {strides = array<i32>} : memref<8x8x32xf32, #tpu.memory_space<vmem>>, vector<1x8x32xf32>,
    %c7_i32 = arith.constant 7 : i32
    %c8_i32_72 = arith.constant 8 : i32
    %263 = arith.muli %c7_i32, %c8_i32_72 : i32
    %264 = tpu.assume_multiple %263, 8 : i32
    %265 = arith.index_cast %264 : i32 to index
    %c0_73 = arith.constant 0 : index
    %266 = vector.load %arg7[%265, %c0_73] : memref<64x384xf32, #tpu.memory_space<vmem>>, vector<8x384xf32>
    %c0_74 = arith.constant 0 : index
    %c0_75 = arith.constant 0 : index
    %267 = vector.load %arg2[%c0_74, %c0_75] : memref<128x384xf32, #tpu.memory_space<vmem>>, vector<128x384xf32>
    %cst_76 = arith.constant dense<0.000000e+00> : vector<8x384xf32>
    %268 = tpu.matmul %257, %267, %cst_76 {dimension_numbers = #tpu.dot_dimension_numbers<[1], [0], [0], [1], [0, 0, 1, 1], [], []>} : vector<8x128xf32>, vector<128x384xf32>, vector<8x384xf32> -> vector<8x384xf32>
    %269 = vector.extract_strided_slice %266 {offsets = [0, 0], sizes = [8, 128], strides = [1, 1]} : vector<8x384xf32> to vector<8x128xf32>
    %270 = vector.extract_strided_slice %268 {offsets = [0, 0], sizes = [8, 128], strides = [1, 1]} : vector<8x384xf32> to vector<8x128xf32>
    %271 = arith.addf %269, %270 : vector<8x128xf32>
    %272 = arith.negf %271 : vector<8x128xf32>
    %273 = math.exp %272 : vector<8x128xf32>
    %cst_77 = arith.constant 1.000000e+00 : f32
    %274 = vector.broadcast %cst_77 : f32 to vector<8x128xf32>
    %275 = arith.addf %274, %273 : vector<8x128xf32>
    %276 = arith.divf %274, %275 : vector<8x128xf32>
    %277 = vector.extract_strided_slice %266 {offsets = [0, 128], sizes = [8, 128], strides = [1, 1]} : vector<8x384xf32> to vector<8x128xf32>
    %278 = vector.extract_strided_slice %268 {offsets = [0, 128], sizes = [8, 128], strides = [1, 1]} : vector<8x384xf32> to vector<8x128xf32>
    %279 = arith.addf %277, %278 : vector<8x128xf32>
    %280 = arith.negf %279 : vector<8x128xf32>
    %281 = math.exp %280 : vector<8x128xf32>
    %cst_78 = arith.constant 1.000000e+00 : f32
    %282 = vector.broadcast %cst_78 : f32 to vector<8x128xf32>
    %283 = arith.addf %282, %281 : vector<8x128xf32>
    %284 = arith.divf %282, %283 : vector<8x128xf32>
    %285 = vector.extract_strided_slice %266 {offsets = [0, 256], sizes = [8, 128], strides = [1, 1]} : vector<8x384xf32> to vector<8x128xf32>
    %286 = vector.extract_strided_slice %268 {offsets = [0, 256], sizes = [8, 128], strides = [1, 1]} : vector<8x384xf32> to vector<8x128xf32>
    %287 = arith.addf %286, %9 : vector<8x128xf32>
    %288 = arith.mulf %276, %287 : vector<8x128xf32>
    %289 = arith.addf %285, %288 : vector<8x128xf32>
    %290 = math.tanh %289 : vector<8x128xf32>
    %291 = arith.subf %257, %290 : vector<8x128xf32>
    %292 = arith.mulf %284, %291 : vector<8x128xf32>
    %293 = arith.addf %290, %292 : vector<8x128xf32>
    %294 = vector.extract_strided_slice %293 {offsets = [0, 0], sizes = [8, 32], strides = [1, 1]} : vector<8x128xf32> to vector<8x32xf32>
    %295 = arith.index_cast %c7_i32 : i32 to index
    %c0_79 = arith.constant 0 : index
    %c0_80 = arith.constant 0 : index
    %296 = vector.load %arg5[%295, %c0_79, %c0_80] : memref<8x8x32xf32, #tpu.memory_space<vmem>>, vector<1x8x32xf32>
    %297 = vector.shape_cast %296 : vector<1x8x32xf32> to vector<8x32xf32>
    %298 = vector.shape_cast %294 : vector<8x32xf32> to vector<1x8x32xf32>
    tpu.vector_store %arg5[%295, %c0_79, %c0_80], %298 {strides = array<i32>} : memref<8x8x32xf32, #tpu.memory_space<vmem>>, vector<1x8x32xf32>,
    %c8_i32_81 = arith.constant 8 : i32
    %299 = vector.extract_strided_slice %293 {offsets = [0, 0], sizes = [8, 32], strides = [1, 1]} : vector<8x128xf32> to vector<8x32xf32>
    %c0_82 = arith.constant 0 : index
    %c0_83 = arith.constant 0 : index
    %c0_84 = arith.constant 0 : index
    %300 = vector.load %arg6[%c0_82, %c0_83, %c0_84] : memref<1x8x32xf32, #tpu.memory_space<vmem>>, vector<1x8x32xf32>
    %301 = vector.shape_cast %300 : vector<1x8x32xf32> to vector<8x32xf32>
    %302 = vector.shape_cast %299 : vector<8x32xf32> to vector<1x8x32xf32>
    tpu.vector_store %arg6[%c0_82, %c0_83, %c0_84], %302 {strides = array<i32>} : memref<1x8x32xf32, #tpu.memory_space<vmem>>, vector<1x8x32xf32>,
    return
  }
}

</mosaic_0001>

<bundles_post_ra>
// kernel: tpu_custom_call.1
= control target key start
LH: loop header
LB: loop body
LE: loop exit
PB: predicated region body
PF: predicated region fallthrough
CT: control target
= control target key end

     0   :  { %12 = vsyncpa [#allocation4], 0  ;;  %s3873_s0 = inlined_call_operand.vmem [shape: f32[64,16], index: 0, kind: input, shape index: {}]   ;;  %s3874_s1 = inlined_call_operand.vmem [shape: f32[16,384], index: 1, kind: input, shape index: {}]   ;;  %s3875_s2 = inlined_call_operand.hbm [shape: f32[128,384], index: 2, kind: input, shape index: {}]   ;;  %s3876_s3 = inlined_call_operand.vmem [shape: f32[1,384], index: 3, kind: input, shape index: {}]   ;;  %s3877_s4 = inlined_call_operand.vmem [shape: f32[1,128], index: 4, kind: input, shape index: {}]   ;;  %s3878_s5 = inlined_call_operand.hbm [shape: f32[8,8,32], index: 5, kind: output, shape index: {0}]   ;;  %s3879_s6 = inlined_call_operand.hbm [shape: f32[1,8,32], index: 6, kind: output, shape index: {1}]  }
   0x1   :  { %13 = vsyncpa [#allocation5], 0 }
   0x2   :  { %14 = vsyncpa [#allocation8], 0  ;;  %s3251_s21 = smov [#allocation3]   ;;  %s3179_s25 = scalar_lea.hbm %s3875_s2, 6144 }
   0x3   :  { %s24_s22 = sshll.u32 %s3251_s21, 4  ;;  %p3180_p0 = scmp.ne.s32.totalorder %s3875_s2, %s3179_s25  ;;  %s25_s22 = int_to_ptr.vmem [resolvable:$true] %s24_s22 }
   0x4   :  { %p3183_p1 = scmp.lt.u32.totalorder %s3179_s25, %s3875_s2 }
   0x6   :  { %p3185_p2 = pnand %p3183_p1, %p3180_p0 }
   0x8   :  { %3188 = shalt.err (!%p3185_p2)
}
   0x9   :  { %s3189_s30 = scalar_lea.vmem %s25_s22, 6144  ;;  %p3194_p4 = scmp.lt.s32.totalorder %s25_s22, %s25_s22 }
   0xa   :  { %p3190_p3 = scmp.ne.s32.totalorder %s25_s22, %s3189_s30  ;;  %p3195_p5 = scmp.lt.s32.totalorder %s3189_s30, %s3189_s30 }
   0xc   :  { %p3196_p6 = por %p3195_p5, %p3194_p4 }
   0xe   :  { %p3197_p7 = pnand %p3196_p6, %p3190_p3 }
  0x10   :  { %3200 = shalt.err (!%p3197_p7)
}
  0x11   :  { %s3252_s7 = smov 384   ;;  %s3253_s8 = smov 24  }
  0x12   :  { %30 = dma.hbm_to_vmem [thread:$0]  %s3875_s2, 6144, %s25_s22, [#allocation4], %s3252_s7, %s3252_s7, %s3253_s8  }
  0x13   :  { %3245 = dma.done.wait [#allocation4], 6144  }
  0x14   :  { %3246 = vsyncadd [#allocation4], 4294961152  ;;  %v3254_v0 = vmov 0.0   ;;  %v47_v1 = vld [vmem:[%s3874_s1 + $0x8] sm:$0xff]  ;;  %v50_v2 = vld [vmem:[%s3874_s1 + $0x20] sm:$0xff]  ;;  %vm69_vm0 = vcmask 130048  }
  0x15   :  { %158 = vmatprep.mubr.f32.mxu0 %v3254_v0  ;;  %v46_v3 = vld [vmem:[%s3874_s1] sm:$0xff]  ;;  %v2601_v4 = vpack.c.bf16 %v50_v2, %v47_v1  ;;  %v49_v5 = vld [vmem:[%s3874_s1 + $0x18] sm:$0xff]  ;;  %v353_v9 = vld [vmem:[#allocation3 + $0x20] sm:$0xff]  ;;  %v3255_v48 = vmov 0.0|0.0   ;;  %vm3256_vm1 = vmmov 0   ;;  %vm559_vm2 = vcmask 261120  }
  0x16   :  { %v38_v6 = vld [vmem:[%s3873_s0] sm:$0xff]  ;;  %v350_v7 = vld [vmem:[#allocation3 + $0x8] sm:$0xff]  ;;  %v2603_v8 = vpack.c.bf16 %v49_v5, %v46_v3  ;;  %v349_v10 = vld [vmem:[#allocation3] sm:$0xff]  ;;  %s3258_s16 = smov [#allocation7]  }
  0x17   :  { %v352_v11 = vld [vmem:[#allocation3 + $0x18] sm:$0xff]  ;;  %2309 = vmatprep.mubr.msk.f32.mxu1 %vm69_vm0, %v38_v6  ;;  %2602 = vmatprep.subr.bf16.mxu0 %v2601_v4  ;;  %v3325_v12 = vpack.c.bf16 %v353_v9, %v350_v7  ;;  %v359_v14 = vld [vmem:[#allocation3 + $0x50] sm:$0xff]  ;;  %v358_v18 = vld [vmem:[#allocation3 + $0x48] sm:$0xff]  ;;  %s2106_s17 = sshll.u32 %s3258_s16, 4  ;;  %s3840_s17 = int_to_ptr.vmem [resolvable:$true] %s2106_s17 }
  0x18   :  { %v356_v13 = vld [vmem:[#allocation3 + $0x38] sm:$0xff]  ;;  %2604 = vmatpush1.bf16.msra.mxu0 %v2603_v8  ;;  %v3327_v15 = vpack.c.bf16 %v352_v11, %v349_v10  ;;  %v355_v17 = vld [vmem:[#allocation3 + $0x30] sm:$0xff]  ;;  %v362_v19 = vld [vmem:[#allocation3 + $0x68] sm:$0xff] }
  0x19   :  { %2610 = vmatprep.subr.bf16.mxu0 %v3325_v12  ;;  %v3330_v16 = vpack.c.bf16 %v359_v14, %v356_v13  ;;  %v365_v20 = vld [vmem:[#allocation3 + $0x80] sm:$0xff]  ;;  %v39_v21 = vld [vmem:[%s3873_s0 + $0x8] sm:$0xff]  ;;  %v3338_v22 = vpack.c.bf16 %v358_v18, %v355_v17  ;;  %v371_v27 = vld [vmem:[#allocation3 + $0xb0] sm:$0xff] }
  0x1a   :  { %v3341_v23 = vpack.c.bf16 %v365_v20, %v362_v19  ;;  %v361_v24 = vld [vmem:[#allocation3 + $0x60] sm:$0xff]  ;;  %v364_v25 = vld [vmem:[#allocation3 + $0x78] sm:$0xff]  ;;  %v367_v34 = vld [vmem:[#allocation3 + $0x90] sm:$0xff] }
  0x1b   :  { %2126 = vmatmul.mubr.msk.f32.vlgmr.msra.gmra.mrb[0].mxu0 %vm69_vm0, %v38_v6  ;;  %v368_v26 = vld [vmem:[#allocation3 + $0x98] sm:$0xff]  ;;  %v48_v28 = vld [vmem:[%s3874_s1 + $0x10] sm:$0xff]  ;;  %v3355_v31 = vpack.c.bf16 %v364_v25, %v361_v24  ;;  %v370_v35 = vld [vmem:[#allocation3 + $0xa8] sm:$0xff] }
  0x1c   :  { %2612 = vmatpush1.bf16.msra.mxu0 %v3327_v15  ;;  %164 = vmatprep.mubr.f32.mxu0 %v3254_v0  ;;  %v51_v29 = vld [vmem:[%s3874_s1 + $0x28] sm:$0xff]  ;;  %v40_v30 = vld [vmem:[%s3873_s0 + $0x10] sm:$0xff]  ;;  %v3358_v33 = vpack.c.bf16 %v371_v27, %v368_v26  ;;  %v351_v36 = vld [vmem:[#allocation3 + $0x10] sm:$0xff]  ;;  %v3368_v42 = vpack.c.bf16 %v370_v35, %v367_v34  ;;  %v54_v35 = vlaneseq }
  0x1d   :  { %2614 = vmatprep.subr.bf16.mxu0 %v3330_v16  ;;  %v2605_v32 = vpack.c.bf16 %v51_v29, %v48_v28  ;;  %v374_v37 = vld [vmem:[#allocation3 + $0xc8] sm:$0xff]  ;;  %v377_v38 = vld [vmem:[#allocation3 + $0xe0] sm:$0xff]  ;;  %v360_v44 = vld [vmem:[#allocation3 + $0x58] sm:$0xff] }
  0x1e   :  { %v354_v39 = vld [vmem:[#allocation3 + $0x28] sm:$0xff]  ;;  %v357_v43 = vld [vmem:[#allocation3 + $0x40] sm:$0xff]  ;;  %v3371_v45 = vpack.c.bf16 %v377_v38, %v374_v37  ;;  %v376_v47 = vld [vmem:[#allocation3 + $0xd8] sm:$0xff] }
  0x1f   :  { %2127 = vmatmul.mubr.msk.f32.gmra.mrb[2].mxu0 %vm69_vm0, %v39_v21  ;;  %2606 = vmatprep.subr.bf16.mxu1 %v2605_v32  ;;  %v3361_v40 = vpack.c.bf16 %v354_v39, %v351_v36  ;;  %v41_v41 = vld [vmem:[%s3873_s0 + $0x18] sm:$0xff]  ;;  %v373_v46 = vld [vmem:[#allocation3 + $0xc0] sm:$0xff]  ;;  %v380_v49 = vld [vmem:[#allocation3 + $0xf8] sm:$0xff]  ;;  %v3377_v51 = vpack.c.bf16 %v360_v44, %v357_v43  ;;  %v55_v36 = vshrl.u32 %v54_v35, 7 }
  0x20   :  { %2616 = vmatpush1.bf16.msra.mxu0 %v3338_v22  ;;  %170 = vmatprep.mubr.f32.mxu0 %v3254_v0  ;;  %v383_v50 = vld [vmem:[#allocation3 + $0x110] sm:$0xff]  ;;  %v3384_v53 = vpack.c.bf16 %v376_v47, %v373_v46  ;;  %v366_v55 = vld [vmem:[#allocation3 + $0x88] sm:$0xff]  ;;  %v389_v60 = vld [vmem:[#allocation3 + $0x140] sm:$0xff] }
  0x21   :  { %2618 = vmatprep.subr.bf16.mxu0 %v3341_v23  ;;  %2608 = vmatpush3.bf16.msra.mxu1 %v2605_v32  ;;  %v42_v52 = vld [vmem:[%s3873_s0 + $0x20] sm:$0xff]  ;;  %v3387_v56 = vpack.c.bf16 %v383_v50, %v380_v49  ;;  %v382_v58 = vld [vmem:[#allocation3 + $0x108] sm:$0xff]  ;;  %v43_v62 = vld [vmem:[%s3873_s0 + $0x28] sm:$0xff]  ;;  %v64_v37 = vsub.s32 2, %v55_v36 }
  0x22   :  { %2641 = vmatprep.subr.bf16.mxu1 %v3255_v48  ;;  %v363_v54 = vld [vmem:[#allocation3 + $0x70] sm:$0xff]  ;;  %v386_v59 = vld [vmem:[#allocation3 + $0x128] sm:$0xff]  ;;  %v369_v1 = vld [vmem:[#allocation3 + $0xa0] sm:$0xff] }
  0x23   :  { %2128 = vmatmul.mubr.msk.f32.gmra.mrb[4].mxu0 %vm69_vm0, %v40_v30  ;;  %v379_v57 = vld [vmem:[#allocation3 + $0xf0] sm:$0xff]  ;;  %v3393_v61 = vpack.c.bf16 %v366_v55, %v363_v54  ;;  %v372_v2 = vld [vmem:[#allocation3 + $0xb8] sm:$0xff]  ;;  %v3403_v3 = vpack.c.bf16 %v389_v60, %v386_v59  ;;  %v385_v4 = vld [vmem:[#allocation3 + $0x120] sm:$0xff] }
  0x24   :  { %2620 = vmatpush1.bf16.msra.mxu0 %v3355_v31  ;;  %176 = vmatprep.mubr.f32.mxu0 %v3254_v0  ;;  %v3400_v63 = vpack.c.bf16 %v382_v58, %v379_v57  ;;  %v388_v5 = vld [vmem:[#allocation3 + $0x138] sm:$0xff]  ;;  %v395_v7 = vld [vmem:[#allocation3 + $0x170] sm:$0xff]  ;;  %v3409_v8 = vpack.c.bf16 %v372_v2, %v369_v1  ;;  %v44_v9 = vld [vmem:[%s3873_s0 + $0x30] sm:$0xff] }
  0x25   :  { %2622 = vmatprep.subr.bf16.mxu0 %v3358_v33  ;;  %2310 = vmatmul.mubr.msk.f32.vlgmr.msra.gmra.mrb[0].mxu1 %vm69_vm0, %v39_v21  ;;  %v392_v6 = vld [vmem:[#allocation3 + $0x158] sm:$0xff]  ;;  %v3416_v10 = vpack.c.bf16 %v388_v5, %v385_v4  ;;  %v375_v11 = vld [vmem:[#allocation3 + $0xd0] sm:$0xff]  ;;  %v378_v13 = vld [vmem:[#allocation3 + $0xe8] sm:$0xff]  ;;  %v60_v5 = vsub.s32 1, %v55_v36 }
  0x26   :  { %2643 = vmatpush3.bf16.msra.mxu1 %v3361_v40  ;;  %2312 = vmatprep.mubr.msk.f32.mxu1 %vm69_vm0, %v40_v30  ;;  %v3419_v14 = vpack.c.bf16 %v395_v7, %v392_v6  ;;  %v391_v17 = vld [vmem:[#allocation3 + $0x150] sm:$0xff]  ;;  %v394_v18 = vld [vmem:[#allocation3 + $0x168] sm:$0xff]  ;;  %v3425_v19 = vpack.c.bf16 %v378_v13, %v375_v11  ;;  %v381_v24 = vld [vmem:[#allocation3 + $0x100] sm:$0xff] }
  0x27   :  { %2129 = vmatmul.mubr.msk.f32.gmra.mrb[6].mxu0 %vm69_vm0, %v41_v41  ;;  %2644 = vmatprep.subr.bf16.mxu1 %v3255_v48  ;;  %v45_v20 = vld [vmem:[%s3873_s0 + $0x38] sm:$0xff]  ;;  %v3432_v21 = vpack.c.bf16 %v394_v18, %v391_v17  ;;  %v384_v25 = vld [vmem:[#allocation3 + $0x118] sm:$0xff]  ;;  %v387_v27 = vld [vmem:[#allocation3 + $0x130] sm:$0xff] }
  0x28   :  { %2624 = vmatpush1.bf16.msra.mxu0 %v3368_v42  ;;  %182 = vmatprep.mubr.f32.mxu0 %v3254_v0  ;;  %v3439_v26 = vpack.c.bf16 %v384_v25, %v381_v24  ;;  %v390_v28 = vld [vmem:[#allocation3 + $0x148] sm:$0xff]  ;;  %v393_v30 = vld [vmem:[#allocation3 + $0x160] sm:$0xff]  ;;  %v396_v32 = vld [vmem:[#allocation3 + $0x178] sm:$0xff] }
  0x29   :  { %2626 = vmatprep.subr.bf16.mxu0 %v3371_v45  ;;  %2313 = vmatmul.mubr.msk.f32.gmra.mrb[2].mxu1 %vm69_vm0, %v41_v41  ;;  %v3449_v29 = vpack.c.bf16 %v390_v28, %v387_v27  ;;  %v3458_v34 = vpack.c.bf16 %v396_v32, %v393_v30  ;;  %v52_v38 = vld [vmem:[%s3876_s3] sm:$0x7] }
  0x2a   :  { %2646 = vmatpush3.bf16.msra.mxu1 %v3377_v51  ;;  %2315 = vmatprep.mubr.msk.f32.mxu1 %vm69_vm0, %v42_v52  ;;  %v65_v39 = vrot.slane %v52_v38, %v64_v37  ;;  %v3516_v11 = vrot.slane %v52_v38, %v60_v5  ;;  %v3522_v27 = vld [vmem:[%s3877_s4] ss:$0 sm:$0xff]  ;;  %s3257_s4 = smov [#allocation6]  }
  0x2b   :  { %2130 = vmatmul.mubr.msk.f32.gmra.mrb[8].mxu0 %vm69_vm0, %v42_v52  ;;  %2647 = vmatprep.subr.bf16.mxu1 %v3255_v48  ;;  %v56_v52 = vsub.s32 0, %v55_v36  ;;  %s2093_s15 = sshll.u32 %s3257_s4, 4  ;;  %s2094_s15 = int_to_ptr.vmem [resolvable:$true] %s2093_s15 }
  0x2c   :  { %2628 = vmatpush1.bf16.msra.mxu0 %v3384_v53  ;;  %188 = vmatprep.mubr.f32.mxu0 %v3254_v0  ;;  %s3201_s2 = scalar_lea.vmem %s2094_s15, 1024  ;;  %p3206_p9 = scmp.lt.s32.totalorder %s2094_s15, %s2094_s15 }
  0x2d   :  { %2630 = vmatprep.subr.bf16.mxu0 %v3387_v56  ;;  %2316 = vmatmul.mubr.msk.f32.gmra.mrb[4].mxu1 %vm69_vm0, %v43_v62  ;;  %v3507_v58 = vrot.slane %v52_v38, %v56_v52  ;;  %p3202_p8 = scmp.ne.s32.totalorder %s2094_s15, %s3201_s2  ;;  %p3207_p10 = scmp.lt.s32.totalorder %s3201_s2, %s3201_s2 }
  0x2e   :  { %2649 = vmatpush3.bf16.msra.mxu1 %v3393_v61  ;;  %2318 = vmatprep.mubr.msk.f32.mxu1 %vm69_vm0, %v44_v9 }
  0x2f   :  { %2131 = vmatmul.mubr.msk.f32.gmra.mrb[10].mxu0 %vm69_vm0, %v43_v62  ;;  %2650 = vmatprep.subr.bf16.mxu1 %v3255_v48  ;;  %p3208_p11 = por %p3207_p10, %p3206_p9 }
  0x30   :  { %2632 = vmatpush1.bf16.msra.mxu0 %v3400_v63  ;;  %194 = vmatprep.mubr.f32.mxu0 %v3254_v0 }
  0x31   :  { %2634 = vmatprep.subr.bf16.mxu0 %v3403_v3  ;;  %2319 = vmatmul.mubr.msk.f32.gmra.mrb[6].mxu1 %vm69_vm0, %v45_v20  ;;  %p3209_p12 = pnand %p3208_p11, %p3202_p8 }
  0x32   :  { %2652 = vmatpush3.bf16.msra.mxu1 %v3409_v8  ;;  %2353 = vmatprep.mubr.msk.f32.mxu1 %vm3256_vm1, %v3254_v0 }
  0x33   :  { %2132 = vmatmul.mubr.msk.f32.gmra.mrb[12].mxu0 %vm69_vm0, %v44_v9  ;;  %2653 = vmatprep.subr.bf16.mxu1 %v3255_v48 }
  0x34   :  { %2636 = vmatpush1.bf16.msra.mxu0 %v3416_v10  ;;  %200 = vmatprep.mubr.f32.mxu0 %v3254_v0 }
  0x35   :  { %2638 = vmatprep.subr.bf16.mxu0 %v3419_v14 }
  0x36   :  { %2655 = vmatpush3.bf16.msra.mxu1 %v3425_v19 }
  0x37   :  { %2133 = vmatmul.mubr.msk.f32.gmra.mrb[14].mxu0 %vm69_vm0, %v45_v20  ;;  %2656 = vmatprep.subr.bf16.mxu1 %v3255_v48 }
  0x38   :  { %2640 = vmatpush1.bf16.msra.mxu0 %v3432_v21  ;;  %461 = vmatprep.mubr.f32.mxu0 %v3254_v0 }
  0x39   :  { %2666 = vmatprep.subr.bf16.mxu0 %v3325_v12 }
  0x3a   :  { %2658 = vmatpush3.bf16.msra.mxu1 %v3439_v26 }
  0x3b   :  { %462 = vmatmul.mubr.f32.vlgmr.msra.gmra.mrb[0].mxu0 %v3254_v0  ;;  %2659 = vmatprep.subr.bf16.mxu1 %v3255_v48 }
  0x3c   :  { %2668 = vmatpush1.bf16.msra.mxu0 %v3327_v15  ;;  %679 = vmatprep.mubr.f32.mxu0 %v3254_v0 }
  0x3d   :  { %2670 = vmatprep.subr.bf16.mxu0 %v3330_v16 }
  0x3e   :  { %2661 = vmatpush3.bf16.msra.mxu1 %v3449_v29 }
  0x3f   :  { %2662 = vmatprep.subr.bf16.mxu1 %v3255_v48 }
  0x40   :  { %2672 = vmatpush1.bf16.msra.mxu0 %v3338_v22 }
  0x41   :  { %2674 = vmatprep.subr.bf16.mxu0 %v3341_v23 }
  0x42   :  { %2664 = vmatpush3.bf16.msra.mxu1 %v3458_v34 }
  0x43   :  { %2697 = vmatprep.subr.bf16.mxu1 %v3255_v48 }
  0x44   :  { %2676 = vmatpush1.bf16.msra.mxu0 %v3355_v31 }
  0x45   :  { %2354 = vmatmul.mubr.f32.vlgmr.msra.gmra.mrb[8].mxu1 %v3254_v0  ;;  %2678 = vmatprep.subr.bf16.mxu0 %v3358_v33 }
  0x46   :  { %2699 = vmatpush3.bf16.msra.mxu1 %v3361_v40  ;;  %2388 = vmatprep.mubr.msk.f32.mxu1 %vm3256_vm1, %v3254_v0 }
  0x47   :  { %2700 = vmatprep.subr.bf16.mxu1 %v3255_v48 }
  0x48   :  { %2680 = vmatpush1.bf16.msra.mxu0 %v3368_v42 }
  0x49   :  { %2682 = vmatprep.subr.bf16.mxu0 %v3371_v45 }
  0x4a   :  { %2702 = vmatpush3.bf16.msra.mxu1 %v3377_v51 }
  0x4b   :  { %2703 = vmatprep.subr.bf16.mxu1 %v3255_v48 }
  0x4c   :  { %2684 = vmatpush1.bf16.msra.mxu0 %v3384_v53 }
  0x4d   :  { %2686 = vmatprep.subr.bf16.mxu0 %v3387_v56 }
  0x4e   :  { %2705 = vmatpush3.bf16.msra.mxu1 %v3393_v61 }
  0x4f   :  { %2706 = vmatprep.subr.bf16.mxu1 %v3255_v48 }
  0x50   :  { %2688 = vmatpush1.bf16.msra.mxu0 %v3400_v63 }
  0x51   :  { %2690 = vmatprep.subr.bf16.mxu0 %v3403_v3 }
  0x52   :  { %2708 = vmatpush3.bf16.msra.mxu1 %v3409_v8 }
  0x53   :  { %2709 = vmatprep.subr.bf16.mxu1 %v3255_v48 }
  0x54   :  { %2692 = vmatpush1.bf16.msra.mxu0 %v3416_v10 }
  0x55   :  { %2694 = vmatprep.subr.bf16.mxu0 %v3419_v14 }
  0x56   :  { %2711 = vmatpush3.bf16.msra.mxu1 %v3425_v19 }
  0x57   :  { %2712 = vmatprep.subr.bf16.mxu1 %v3255_v48 }
  0x58   :  { %2696 = vmatpush1.bf16.msra.mxu0 %v3432_v21 }
  0x59   :  { %2722 = vmatprep.subr.bf16.mxu0 %v3325_v12 }
  0x5a   :  { %2714 = vmatpush3.bf16.msra.mxu1 %v3439_v26 }
  0x5b   :  { %2715 = vmatprep.subr.bf16.mxu1 %v3255_v48 }
  0x5e   :  { %2717 = vmatpush3.bf16.msra.mxu1 %v3449_v29 }
  0x5f   :  { %2718 = vmatprep.subr.bf16.mxu1 %v3255_v48 }
  0x62   :  { %2720 = vmatpush3.bf16.msra.mxu1 %v3458_v34 }
  0x63   :  { %2753 = vmatprep.subr.bf16.mxu1 %v3255_v48 }
  0xf8   :  { %v2311_v41 = vpop.f32.mrb[0].mxu1 }
  0xf9   :  { %v3499_v43 = vadd.f32 %v2311_v41, %v65_v39  ;;  %v273_v44 = vpop.f32.mrb[1].mxu1 }
  0xfa   :  { %v274_v35 = vadd.f32 %v273_v44, %v65_v39 }
  0xfc   :  { %v2314_v46 = vpop.f32.mrb[2].mxu1 }
  0xfd   :  { %v3501_v47 = vadd.f32 %v2314_v46, %v65_v39  ;;  %v283_v49 = vpop.f32.mrb[3].mxu1 }
  0xfe   :  { %v3503_v50 = vadd.f32 %v283_v49, %v65_v39 }
 0x100   :  { %v2317_v54 = vpop.f32.mrb[4].mxu1 }
 0x101   :  { %v3505_v55 = vadd.f32 %v2317_v54, %v65_v39  ;;  %v293_v57 = vpop.f32.mrb[5].mxu1 }
 0x102   :  { %v3509_v59 = vadd.f32 %v293_v57, %v65_v39 }
 0x104   :  { %v2320_v60 = vpop.f32.mrb[6].mxu1 }
 0x105   :  { %v3511_v1 = vadd.f32 %v2320_v60, %v65_v39  ;;  %v303_v2 = vpop.f32.mrb[7].mxu1 }
 0x106   :  { %v3514_v7 = vadd.f32 %v303_v2, %v65_v39 }
 0x10e   :  { %v463_v62 = vpop.f32.mrb[0].mxu0 }
 0x10f   :  { %v3057_v4 = vadd.f32 %v463_v62, %v3507_v58  ;;  %v465_v6 = vpop.f32.mrb[1].mxu0 }
 0x110   :  { %v3058_v13 = vadd.f32 %v465_v6, %v3516_v11 }
 0x111   :  { %v2143_v9 = vmul.f32 -1.442695, %v3057_v4 }
 0x112   :  { %v2144_v20 = vmul.f32 -1.442695, %v3058_v13 }
 0x113   :  { %3099 = vpow2.f32 %v2143_v9 }
 0x114   :  { %3101 = vpow2.f32 %v2144_v20 }
 0x118   :  { %v534_v17 = vpop.f32.mrb[8].mxu1 }
 0x119   :  { %v2355_v18 = vpop.f32.mrb[9].mxu1  ;;  %v552_v28 = vadd.f32 %v3522_v27, %v534_v17 }
 0x11d   :  { %v3100_v24 = vpop.eup %3099 }
 0x11e   :  { %v542_v25 = vadd.f32 1.0, %v3100_v24  ;;  %v3102_v30 = vpop.eup %3101 }
 0x11f   :  { %v549_v37 = vadd.f32 1.0, %v3102_v30 }
 0x120   :  { %3103 = vrcp.f32 %v542_v25 }
 0x12a   :  { %v3104_v32 = vpop.eup %3103 }
 0x12b   :  { %v553_v36 = vmul.f32 %v3104_v32, %v552_v28 }
 0x12d   :  { %v554_v38 = vadd.f32 %v553_v36, %v274_v35  ;;  %v1225_v36 = vld [vmem:[#allocation3 + $0x20] sm:$0xff] }
 0x12f   :  { %3105 = vtanh.f32 %v554_v38  ;;  %v1224_v38 = vld [vmem:[#allocation3 + $0x18] sm:$0xff] }
 0x130   :  { %3107 = vrcp.f32 %v549_v37 }
 0x139   :  { %v3106_v41 = vpop.eup %3105 }
 0x13a   :  { %v556_v46 = vsub.f32 0.0, %v3106_v41  ;;  %v3108_v49 = vpop.eup %3107 }
 0x13c   :  { %v557_v52 = vmul.f32 %v3108_v49, %v556_v46  ;;  %v1228_v46 = vld [vmem:[#allocation3 + $0x38] sm:$0xff] }
 0x13e   :  { %v3525_v54 = vadd.f32 %v3106_v41, %v557_v52  ;;  %v1227_v52 = vld [vmem:[#allocation3 + $0x30] sm:$0xff] }
 0x140   :  { %560 = vst.msk [vmem:[#allocation6] sm:$0xff] %vm559_vm2, %v3525_v54  ;;  %680 = vmatmul.mubr.f32.vlgmr.msra.gmra.mrb[2].mxu0 %v3525_v54  ;;  %2389 = vmatmul.mubr.f32.vlgmr.msra.gmra.mrb[10].mxu1 %v3525_v54 }
 0x141   :  { %2724 = vmatpush1.bf16.msra.mxu0 %v3327_v15  ;;  %2755 = vmatpush3.bf16.msra.mxu1 %v3361_v40 }
 0x142   :  { %2726 = vmatprep.subr.bf16.mxu0 %v3330_v16  ;;  %2756 = vmatprep.subr.bf16.mxu1 %v3255_v48 }
 0x143   :  { %897 = vmatprep.mubr.f32.mxu0 %v3254_v0  ;;  %2423 = vmatprep.mubr.msk.f32.mxu1 %vm3256_vm1, %v3254_v0 }
 0x145   :  { %2728 = vmatpush1.bf16.msra.mxu0 %v3338_v22  ;;  %2758 = vmatpush3.bf16.msra.mxu1 %v3377_v51 }
 0x146   :  { %2730 = vmatprep.subr.bf16.mxu0 %v3341_v23  ;;  %2759 = vmatprep.subr.bf16.mxu1 %v3255_v48 }
 0x149   :  { %2732 = vmatpush1.bf16.msra.mxu0 %v3355_v31  ;;  %2761 = vmatpush3.bf16.msra.mxu1 %v3393_v61 }
 0x14a   :  { %2734 = vmatprep.subr.bf16.mxu0 %v3358_v33  ;;  %2762 = vmatprep.subr.bf16.mxu1 %v3255_v48 }
 0x14d   :  { %2736 = vmatpush1.bf16.msra.mxu0 %v3368_v42  ;;  %2764 = vmatpush3.bf16.msra.mxu1 %v3409_v8 }
 0x14e   :  { %2738 = vmatprep.subr.bf16.mxu0 %v3371_v45  ;;  %2765 = vmatprep.subr.bf16.mxu1 %v3255_v48 }
 0x151   :  { %2740 = vmatpush1.bf16.msra.mxu0 %v3384_v53  ;;  %2767 = vmatpush3.bf16.msra.mxu1 %v3425_v19 }
 0x152   :  { %2742 = vmatprep.subr.bf16.mxu0 %v3387_v56  ;;  %2768 = vmatprep.subr.bf16.mxu1 %v3255_v48 }
 0x155   :  { %2744 = vmatpush1.bf16.msra.mxu0 %v3400_v63  ;;  %2770 = vmatpush3.bf16.msra.mxu1 %v3439_v26 }
 0x156   :  { %2746 = vmatprep.subr.bf16.mxu0 %v3403_v3  ;;  %2771 = vmatprep.subr.bf16.mxu1 %v3255_v48 }
 0x159   :  { %2748 = vmatpush1.bf16.msra.mxu0 %v3416_v10  ;;  %2773 = vmatpush3.bf16.msra.mxu1 %v3449_v29 }
 0x15a   :  { %2750 = vmatprep.subr.bf16.mxu0 %v3419_v14  ;;  %2774 = vmatprep.subr.bf16.mxu1 %v3255_v48 }
 0x15d   :  { %2752 = vmatpush1.bf16.msra.mxu0 %v3432_v21  ;;  %2776 = vmatpush3.bf16.msra.mxu1 %v3458_v34 }
 0x15e   :  { %2778 = vmatprep.subr.bf16.mxu0 %v3325_v12  ;;  %2809 = vmatprep.subr.bf16.mxu1 %v3255_v48 }
 0x213   :  { %v681_v39 = vpop.f32.mrb[2].mxu0  ;;  %v752_v44 = vpop.f32.mrb[10].mxu1 }
 0x214   :  { %v3059_v57 = vadd.f32 %v681_v39, %v3507_v58  ;;  %v683_v60 = vpop.f32.mrb[3].mxu0  ;;  %v2390_v62 = vpop.f32.mrb[11].mxu1  ;;  %v770_v12 = vadd.f32 %v3522_v27, %v752_v44  ;;  %v1234_v39 = vld [vmem:[#allocation3 + $0x68] sm:$0xff]  ;;  %v1237_v44 = vld [vmem:[#allocation3 + $0x80] sm:$0xff] }
 0x215   :  { %v3060_v4 = vadd.f32 %v683_v60, %v3516_v11  ;;  %v1233_v60 = vld [vmem:[#allocation3 + $0x60] sm:$0xff]  ;;  %v1236_v62 = vld [vmem:[#allocation3 + $0x78] sm:$0xff] }
 0x216   :  { %v2145_v2 = vmul.f32 -1.442695, %v3059_v57  ;;  %v3637_v57 = vpack.c.bf16 %v1237_v44, %v1234_v39 }
 0x217   :  { %v2146_v5 = vmul.f32 -1.442695, %v3060_v4  ;;  %v1240_v4 = vld [vmem:[#allocation3 + $0x98] sm:$0xff] }
 0x218   :  { %3109 = vpow2.f32 %v2145_v2  ;;  %v3639_v2 = vpack.c.bf16 %v1236_v62, %v1233_v60 }
 0x219   :  { %3111 = vpow2.f32 %v2146_v5  ;;  %v1243_v5 = vld [vmem:[#allocation3 + $0xb0] sm:$0xff] }
 0x222   :  { %v3110_v6 = vpop.eup %3109 }
 0x223   :  { %v760_v9 = vadd.f32 1.0, %v3110_v6  ;;  %v3112_v13 = vpop.eup %3111  ;;  %v3643_v6 = vpack.c.bf16 %v1243_v5, %v1240_v4 }
 0x224   :  { %v767_v24 = vadd.f32 1.0, %v3112_v13  ;;  %v1242_v13 = vld [vmem:[#allocation3 + $0xa8] sm:$0xff] }
 0x225   :  { %3113 = vrcp.f32 %v760_v9  ;;  %v1239_v9 = vld [vmem:[#allocation3 + $0x90] sm:$0xff] }
 0x22f   :  { %v3114_v17 = vpop.eup %3113 }
 0x230   :  { %v771_v18 = vmul.f32 %v3114_v17, %v770_v12  ;;  %v1241_v12 = vld [vmem:[#allocation3 + $0xa0] sm:$0xff]  ;;  %v3645_v17 = vpack.c.bf16 %v1242_v13, %v1239_v9 }
 0x232   :  { %v772_v20 = vadd.f32 %v771_v18, %v3499_v43  ;;  %v1244_v18 = vld [vmem:[#allocation3 + $0xb8] sm:$0xff] }
 0x234   :  { %3115 = vtanh.f32 %v772_v20  ;;  %v3648_v20 = vpack.c.bf16 %v1244_v18, %v1241_v12 }
 0x235   :  { %3117 = vrcp.f32 %v767_v24  ;;  %v1246_v24 = vld [vmem:[#allocation3 + $0xc8] sm:$0xff] }
 0x23e   :  { %v3116_v25 = vpop.eup %3115 }
 0x23f   :  { %v774_v28 = vsub.f32 %v3525_v54, %v3116_v25  ;;  %v3118_v30 = vpop.eup %3117 }
 0x241   :  { %v775_v32 = vmul.f32 %v3118_v30, %v774_v28  ;;  %v1245_v30 = vld [vmem:[#allocation3 + $0xc0] sm:$0xff] }
 0x243   :  { %v776_v35 = vadd.f32 %v3116_v25, %v775_v32  ;;  %v1249_v25 = vld [vmem:[#allocation3 + $0xe0] sm:$0xff]  ;;  %v1248_v32 = vld [vmem:[#allocation3 + $0xd8] sm:$0xff] }
 0x244   :  { %v3652_v28 = vpack.c.bf16 %v1249_v25, %v1246_v24 }
 0x245   :  { %778 = vst.msk [vmem:[#allocation6 + $0x8] sm:$0xff] %vm559_vm2, %v776_v35  ;;  %898 = vmatmul.mubr.f32.vlgmr.msra.gmra.mrb[4].mxu0 %v776_v35  ;;  %2424 = vmatmul.mubr.f32.vlgmr.msra.gmra.mrb[12].mxu1 %v776_v35 }
 0x246   :  { %2780 = vmatpush1.bf16.msra.mxu0 %v3327_v15  ;;  %2811 = vmatpush3.bf16.msra.mxu1 %v3361_v40 }
 0x247   :  { %2782 = vmatprep.subr.bf16.mxu0 %v3330_v16  ;;  %2812 = vmatprep.subr.bf16.mxu1 %v3255_v48 }
 0x248   :  { %1115 = vmatprep.mubr.f32.mxu0 %v3254_v0  ;;  %2458 = vmatprep.mubr.msk.f32.mxu1 %vm3256_vm1, %v3254_v0 }
 0x24a   :  { %2784 = vmatpush1.bf16.msra.mxu0 %v3338_v22  ;;  %2814 = vmatpush3.bf16.msra.mxu1 %v3377_v51 }
 0x24b   :  { %2786 = vmatprep.subr.bf16.mxu0 %v3341_v23  ;;  %2815 = vmatprep.subr.bf16.mxu1 %v3255_v48 }
 0x24e   :  { %2788 = vmatpush1.bf16.msra.mxu0 %v3355_v31  ;;  %2817 = vmatpush3.bf16.msra.mxu1 %v3393_v61 }
 0x24f   :  { %2790 = vmatprep.subr.bf16.mxu0 %v3358_v33  ;;  %2818 = vmatprep.subr.bf16.mxu1 %v3255_v48 }
 0x252   :  { %2792 = vmatpush1.bf16.msra.mxu0 %v3368_v42  ;;  %2820 = vmatpush3.bf16.msra.mxu1 %v3409_v8 }
 0x253   :  { %2794 = vmatprep.subr.bf16.mxu0 %v3371_v45  ;;  %2821 = vmatprep.subr.bf16.mxu1 %v3255_v48 }
 0x256   :  { %2796 = vmatpush1.bf16.msra.mxu0 %v3384_v53  ;;  %2823 = vmatpush3.bf16.msra.mxu1 %v3425_v19 }
 0x257   :  { %2798 = vmatprep.subr.bf16.mxu0 %v3387_v56  ;;  %2824 = vmatprep.subr.bf16.mxu1 %v3255_v48 }
 0x25a   :  { %2800 = vmatpush1.bf16.msra.mxu0 %v3400_v63  ;;  %2826 = vmatpush3.bf16.msra.mxu1 %v3439_v26 }
 0x25b   :  { %2802 = vmatprep.subr.bf16.mxu0 %v3403_v3  ;;  %2827 = vmatprep.subr.bf16.mxu1 %v3255_v48 }
 0x25e   :  { %2804 = vmatpush1.bf16.msra.mxu0 %v3416_v10  ;;  %2829 = vmatpush3.bf16.msra.mxu1 %v3449_v29 }
 0x25f   :  { %2806 = vmatprep.subr.bf16.mxu0 %v3419_v14  ;;  %2830 = vmatprep.subr.bf16.mxu1 %v3255_v48 }
 0x262   :  { %2808 = vmatpush1.bf16.msra.mxu0 %v3432_v21  ;;  %2832 = vmatpush3.bf16.msra.mxu1 %v3458_v34 }
 0x263   :  { %2865 = vmatprep.subr.bf16.mxu1 %v3255_v48 }
 0x318   :  { %v899_v15 = vpop.f32.mrb[4].mxu0  ;;  %v970_v16 = vpop.f32.mrb[12].mxu1 }
 0x319   :  { %v3061_v22 = vadd.f32 %v899_v15, %v3507_v58  ;;  %v901_v23 = vpop.f32.mrb[5].mxu0  ;;  %v2425_v31 = vpop.f32.mrb[13].mxu1  ;;  %v988_v3 = vadd.f32 %v3522_v27, %v970_v16  ;;  %v3655_v15 = vpack.c.bf16 %v1248_v32, %v1245_v30  ;;  %v1250_v16 = vld [vmem:[#allocation3 + $0xe8] sm:$0xff] }
 0x31a   :  { %v3062_v42 = vadd.f32 %v901_v23, %v3516_v11  ;;  %v1255_v23 = vld [vmem:[#allocation3 + $0x110] sm:$0xff] }
 0x31b   :  { %v2147_v33 = vmul.f32 -1.442695, %v3061_v22  ;;  %v1252_v22 = vld [vmem:[#allocation3 + $0xf8] sm:$0xff] }
 0x31c   :  { %v2148_v45 = vmul.f32 -1.442695, %v3062_v42  ;;  %v1251_v42 = vld [vmem:[#allocation3 + $0xf0] sm:$0xff] }
 0x31d   :  { %3119 = vpow2.f32 %v2147_v33  ;;  %v3660_v33 = vpack.c.bf16 %v1255_v23, %v1252_v22 }
 0x31e   :  { %3121 = vpow2.f32 %v2148_v45  ;;  %v1254_v45 = vld [vmem:[#allocation3 + $0x108] sm:$0xff] }
 0x327   :  { %v3120_v53 = vpop.eup %3119 }
 0x328   :  { %v978_v56 = vadd.f32 1.0, %v3120_v53  ;;  %v3122_v63 = vpop.eup %3121  ;;  %v1253_v53 = vld [vmem:[#allocation3 + $0x100] sm:$0xff] }
 0x329   :  { %v985_v19 = vadd.f32 1.0, %v3122_v63  ;;  %v1256_v63 = vld [vmem:[#allocation3 + $0x118] sm:$0xff] }
 0x32a   :  { %3123 = vrcp.f32 %v978_v56  ;;  %v3663_v56 = vpack.c.bf16 %v1254_v45, %v1251_v42 }
 0x334   :  { %v3124_v8 = vpop.eup %3123 }
 0x335   :  { %v989_v10 = vmul.f32 %v3124_v8, %v988_v3  ;;  %v1258_v3 = vld [vmem:[#allocation3 + $0x128] sm:$0xff]  ;;  %v1261_v8 = vld [vmem:[#allocation3 + $0x140] sm:$0xff] }
 0x337   :  { %v990_v14 = vadd.f32 %v989_v10, %v3503_v50  ;;  %v1222_v50 = vld [vmem:[#allocation3 + $0x8] sm:$0xff]  ;;  %v3667_v10 = vpack.c.bf16 %v1256_v63, %v1253_v53 }
 0x338   :  { %v3625_v37 = vpack.c.bf16 %v1225_v36, %v1222_v50  ;;  %v1267_v50 = vld [vmem:[#allocation3 + $0x170] sm:$0xff] }
 0x339   :  { %3125 = vtanh.f32 %v990_v14  ;;  %v3669_v14 = vpack.c.bf16 %v1261_v8, %v1258_v3 }
 0x33a   :  { %3127 = vrcp.f32 %v985_v19  ;;  %2834 = vmatprep.subr.bf16.mxu0 %v3625_v37  ;;  %v1257_v19 = vld [vmem:[#allocation3 + $0x120] sm:$0xff] }
 0x343   :  { %v3126_v21 = vpop.eup %3125 }
 0x344   :  { %v992_v26 = vsub.f32 %v776_v35, %v3126_v21  ;;  %v3128_v29 = vpop.eup %3127  ;;  %v1247_v35 = vld [vmem:[#allocation3 + $0xd0] sm:$0xff] }
 0x345   :  { %v3658_v31 = vpack.c.bf16 %v1250_v16, %v1247_v35 }
 0x346   :  { %v993_v34 = vmul.f32 %v3128_v29, %v992_v26  ;;  %v1259_v26 = vld [vmem:[#allocation3 + $0x130] sm:$0xff]  ;;  %v1262_v29 = vld [vmem:[#allocation3 + $0x148] sm:$0xff] }
 0x348   :  { %v3610_v43 = vadd.f32 %v3126_v21, %v993_v34  ;;  %v1260_v21 = vld [vmem:[#allocation3 + $0x138] sm:$0xff] }
 0x349   :  { %v1264_v34 = vld [vmem:[#allocation3 + $0x158] sm:$0xff]  ;;  %v3673_v36 = vpack.c.bf16 %v1260_v21, %v1257_v19  ;;  %v1447_v19 = vld [vmem:[#allocation3 + $0x40] sm:$0xff] }
 0x34a   :  { %996 = vst.msk [vmem:[#allocation6 + $0x10] sm:$0xff] %vm559_vm2, %v3610_v43  ;;  %1116 = vmatmul.mubr.f32.vlgmr.msra.gmra.mrb[6].mxu0 %v3610_v43  ;;  %2459 = vmatmul.mubr.f32.vlgmr.msra.gmra.mrb[14].mxu1 %v3610_v43  ;;  %v1450_v21 = vld [vmem:[#allocation3 + $0x58] sm:$0xff] }
 0x34b   :  { %2867 = vmatpush3.bf16.msra.mxu1 %v3361_v40  ;;  %1333 = vmatprep.mubr.f32.mxu0 %v3254_v0  ;;  %v1221_v40 = vld [vmem:[#allocation3] sm:$0xff] }
 0x34c   :  { %2868 = vmatprep.subr.bf16.mxu1 %v3255_v48  ;;  %2493 = vmatprep.mubr.msk.f32.mxu1 %vm3256_vm1, %v3254_v0  ;;  %v3627_v41 = vpack.c.bf16 %v1224_v38, %v1221_v40  ;;  %v3677_v40 = vpack.c.bf16 %v1262_v29, %v1259_v26  ;;  %v3679_v38 = vpack.c.bf16 %v1267_v50, %v1264_v34  ;;  %v1453_v29 = vld [vmem:[#allocation3 + $0x70] sm:$0xff]  ;;  %v1456_v34 = vld [vmem:[#allocation3 + $0x88] sm:$0xff] }
 0x34d   :  { %v3728_v26 = vpack.c.bf16 %v1450_v21, %v1447_v19  ;;  %v3732_v50 = vpack.c.bf16 %v1456_v34, %v1453_v29 }
 0x34e   :  { %2836 = vmatpush1.bf16.msra.mxu0 %v3627_v41 }
 0x34f   :  { %2870 = vmatpush3.bf16.msra.mxu1 %v3377_v51  ;;  %v1231_v51 = vld [vmem:[#allocation3 + $0x50] sm:$0xff] }
 0x350   :  { %2871 = vmatprep.subr.bf16.mxu1 %v3255_v48  ;;  %v3631_v49 = vpack.c.bf16 %v1231_v51, %v1228_v46  ;;  %v1263_v46 = vld [vmem:[#allocation3 + $0x150] sm:$0xff]  ;;  %v1266_v51 = vld [vmem:[#allocation3 + $0x168] sm:$0xff] }
 0x351   :  { %v3683_v39 = vpack.c.bf16 %v1266_v51, %v1263_v46 }
 0x352   :  { %2838 = vmatprep.subr.bf16.mxu0 %v3631_v49 }
 0x353   :  { %2873 = vmatpush3.bf16.msra.mxu1 %v3393_v61  ;;  %v1230_v61 = vld [vmem:[#allocation3 + $0x48] sm:$0xff] }
 0x354   :  { %2874 = vmatprep.subr.bf16.mxu1 %v3255_v48  ;;  %v3633_v54 = vpack.c.bf16 %v1230_v61, %v1227_v52  ;;  %v1265_v52 = vld [vmem:[#allocation3 + $0x160] sm:$0xff]  ;;  %v1268_v61 = vld [vmem:[#allocation3 + $0x178] sm:$0xff] }
 0x355   :  { %v3687_v44 = vpack.c.bf16 %v1268_v61, %v1265_v52 }
 0x356   :  { %2840 = vmatpush1.bf16.msra.mxu0 %v3633_v54 }
 0x357   :  { %2842 = vmatprep.subr.bf16.mxu0 %v3637_v57  ;;  %2876 = vmatpush3.bf16.msra.mxu1 %v3648_v20 }
 0x358   :  { %2877 = vmatprep.subr.bf16.mxu1 %v3255_v48 }
 0x35a   :  { %2844 = vmatpush1.bf16.msra.mxu0 %v3639_v2 }
 0x35b   :  { %2846 = vmatprep.subr.bf16.mxu0 %v3643_v6  ;;  %2879 = vmatpush3.bf16.msra.mxu1 %v3658_v31 }
 0x35c   :  { %2880 = vmatprep.subr.bf16.mxu1 %v3255_v48 }
 0x35e   :  { %2848 = vmatpush1.bf16.msra.mxu0 %v3645_v17 }
 0x35f   :  { %2850 = vmatprep.subr.bf16.mxu0 %v3652_v28  ;;  %2882 = vmatpush3.bf16.msra.mxu1 %v3667_v10 }
 0x360   :  { %2883 = vmatprep.subr.bf16.mxu1 %v3255_v48 }
 0x362   :  { %2852 = vmatpush1.bf16.msra.mxu0 %v3655_v15 }
 0x363   :  { %2854 = vmatprep.subr.bf16.mxu0 %v3660_v33  ;;  %2885 = vmatpush3.bf16.msra.mxu1 %v3677_v40 }
 0x364   :  { %2886 = vmatprep.subr.bf16.mxu1 %v3255_v48 }
 0x366   :  { %2856 = vmatpush1.bf16.msra.mxu0 %v3663_v56 }
 0x367   :  { %2858 = vmatprep.subr.bf16.mxu0 %v3669_v14  ;;  %2888 = vmatpush3.bf16.msra.mxu1 %v3687_v44 }
 0x368   :  { %2921 = vmatprep.subr.bf16.mxu1 %v3255_v48 }
 0x36a   :  { %2860 = vmatpush1.bf16.msra.mxu0 %v3673_v36 }
 0x36b   :  { %2862 = vmatprep.subr.bf16.mxu0 %v3679_v38 }
 0x36e   :  { %2864 = vmatpush1.bf16.msra.mxu0 %v3683_v39 }
 0x36f   :  { %2890 = vmatprep.subr.bf16.mxu0 %v3625_v37 }
 0x41d   :  { %v1117_v60 = vpop.f32.mrb[6].mxu0  ;;  %v1188_v62 = vpop.f32.mrb[14].mxu1 }
 0x41e   :  { %v3063_v4 = vadd.f32 %v1117_v60, %v3507_v58  ;;  %v1119_v5 = vpop.f32.mrb[7].mxu0  ;;  %v2460_v9 = vpop.f32.mrb[15].mxu1  ;;  %v1206_v32 = vadd.f32 %v3522_v27, %v1188_v62 }
 0x41f   :  { %v3064_v12 = vadd.f32 %v1119_v5, %v3516_v11 }
 0x420   :  { %v2149_v13 = vmul.f32 -1.442695, %v3063_v4 }
 0x421   :  { %v2150_v18 = vmul.f32 -1.442695, %v3064_v12 }
 0x422   :  { %3129 = vpow2.f32 %v2149_v13 }
 0x423   :  { %3131 = vpow2.f32 %v2150_v18 }
 0x42c   :  { %v3130_v24 = vpop.eup %3129 }
 0x42d   :  { %v1196_v25 = vadd.f32 1.0, %v3130_v24  ;;  %v3132_v30 = vpop.eup %3131 }
 0x42e   :  { %v1203_v23 = vadd.f32 1.0, %v3132_v30 }
 0x42f   :  { %3133 = vrcp.f32 %v1196_v25 }
 0x439   :  { %v3134_v35 = vpop.eup %3133 }
 0x43a   :  { %v1207_v16 = vmul.f32 %v3134_v35, %v1206_v32 }
 0x43c   :  { %v1208_v22 = vadd.f32 %v1207_v16, %v3501_v47  ;;  %v1441_v47 = vld [vmem:[#allocation3 + $0x10] sm:$0xff] }
 0x43e   :  { %3135 = vtanh.f32 %v1208_v22 }
 0x43f   :  { %3137 = vrcp.f32 %v1203_v23 }
 0x448   :  { %v3136_v42 = vpop.eup %3135 }
 0x449   :  { %v1210_v45 = vsub.f32 %v3610_v43, %v3136_v42  ;;  %v3138_v53 = vpop.eup %3137  ;;  %v1444_v43 = vld [vmem:[#allocation3 + $0x28] sm:$0xff] }
 0x44a   :  { %v3724_v8 = vpack.c.bf16 %v1444_v43, %v1441_v47 }
 0x44b   :  { %v1211_v63 = vmul.f32 %v3138_v53, %v1210_v45 }
 0x44d   :  { %v3699_v3 = vadd.f32 %v3136_v42, %v1211_v63 }
 0x44f   :  { %1214 = vst.msk [vmem:[#allocation6 + $0x18] sm:$0xff] %vm559_vm2, %v3699_v3  ;;  %1334 = vmatmul.mubr.f32.vlgmr.msra.gmra.mrb[8].mxu0 %v3699_v3  ;;  %2494 = vmatmul.mubr.f32.vlgmr.msra.gmra.mrb[16].mxu1 %v3699_v3 }
 0x450   :  { %2892 = vmatpush1.bf16.msra.mxu0 %v3627_v41  ;;  %1551 = vmatprep.mubr.f32.mxu0 %v3254_v0 }
 0x451   :  { %2894 = vmatprep.subr.bf16.mxu0 %v3631_v49  ;;  %2528 = vmatprep.mubr.msk.f32.mxu1 %vm3256_vm1, %v3254_v0 }
 0x452   :  { %2923 = vmatpush3.bf16.msra.mxu1 %v3724_v8 }
 0x453   :  { %2924 = vmatprep.subr.bf16.mxu1 %v3255_v48 }
 0x454   :  { %2896 = vmatpush1.bf16.msra.mxu0 %v3633_v54 }
 0x455   :  { %2898 = vmatprep.subr.bf16.mxu0 %v3637_v57 }
 0x456   :  { %2926 = vmatpush3.bf16.msra.mxu1 %v3728_v26 }
 0x457   :  { %2927 = vmatprep.subr.bf16.mxu1 %v3255_v48 }
 0x458   :  { %2900 = vmatpush1.bf16.msra.mxu0 %v3639_v2 }
 0x459   :  { %2902 = vmatprep.subr.bf16.mxu0 %v3643_v6 }
 0x45a   :  { %2929 = vmatpush3.bf16.msra.mxu1 %v3732_v50 }
 0x45b   :  { %2930 = vmatprep.subr.bf16.mxu1 %v3255_v48 }
 0x45c   :  { %2904 = vmatpush1.bf16.msra.mxu0 %v3645_v17 }
 0x45d   :  { %2906 = vmatprep.subr.bf16.mxu0 %v3652_v28 }
 0x45e   :  { %2932 = vmatpush3.bf16.msra.mxu1 %v3648_v20 }
 0x45f   :  { %2933 = vmatprep.subr.bf16.mxu1 %v3255_v48 }
 0x460   :  { %2908 = vmatpush1.bf16.msra.mxu0 %v3655_v15 }
 0x461   :  { %2910 = vmatprep.subr.bf16.mxu0 %v3660_v33 }
 0x462   :  { %2935 = vmatpush3.bf16.msra.mxu1 %v3658_v31 }
 0x463   :  { %2936 = vmatprep.subr.bf16.mxu1 %v3255_v48 }
 0x464   :  { %2912 = vmatpush1.bf16.msra.mxu0 %v3663_v56 }
 0x465   :  { %2914 = vmatprep.subr.bf16.mxu0 %v3669_v14 }
 0x466   :  { %2938 = vmatpush3.bf16.msra.mxu1 %v3667_v10 }
 0x467   :  { %2939 = vmatprep.subr.bf16.mxu1 %v3255_v48 }
 0x468   :  { %2916 = vmatpush1.bf16.msra.mxu0 %v3673_v36 }
 0x469   :  { %2918 = vmatprep.subr.bf16.mxu0 %v3679_v38 }
 0x46a   :  { %2941 = vmatpush3.bf16.msra.mxu1 %v3677_v40 }
 0x46b   :  { %2942 = vmatprep.subr.bf16.mxu1 %v3255_v48 }
 0x46c   :  { %2920 = vmatpush1.bf16.msra.mxu0 %v3683_v39 }
 0x46d   :  { %2946 = vmatprep.subr.bf16.mxu0 %v3625_v37 }
 0x46e   :  { %2944 = vmatpush3.bf16.msra.mxu1 %v3687_v44 }
 0x46f   :  { %2977 = vmatprep.subr.bf16.mxu1 %v3255_v48 }
 0x522   :  { %v1335_v46 = vpop.f32.mrb[8].mxu0  ;;  %v1406_v51 = vpop.f32.mrb[16].mxu1 }
 0x523   :  { %v3065_v52 = vadd.f32 %v1335_v46, %v3507_v58  ;;  %v1337_v61 = vpop.f32.mrb[9].mxu0  ;;  %v2495_v60 = vpop.f32.mrb[17].mxu1  ;;  %v1424_v18 = vadd.f32 %v3522_v27, %v1406_v51 }
 0x524   :  { %v3066_v4 = vadd.f32 %v1337_v61, %v3516_v11 }
 0x525   :  { %v2151_v62 = vmul.f32 -1.442695, %v3065_v52 }
 0x526   :  { %v2152_v5 = vmul.f32 -1.442695, %v3066_v4 }
 0x527   :  { %3139 = vpow2.f32 %v2151_v62 }
 0x528   :  { %3141 = vpow2.f32 %v2152_v5 }
 0x531   :  { %v3140_v9 = vpop.eup %3139 }
 0x532   :  { %v1414_v13 = vadd.f32 1.0, %v3140_v9  ;;  %v3142_v12 = vpop.eup %3141 }
 0x533   :  { %v1421_v32 = vadd.f32 1.0, %v3142_v12 }
 0x534   :  { %3143 = vrcp.f32 %v1414_v13 }
 0x53e   :  { %v3144_v24 = vpop.eup %3143 }
 0x53f   :  { %v1425_v25 = vmul.f32 %v3144_v24, %v1424_v18 }
 0x541   :  { %v1426_v30 = vadd.f32 %v1425_v25, %v3509_v59 }
 0x543   :  { %3145 = vtanh.f32 %v1426_v30 }
 0x544   :  { %3147 = vrcp.f32 %v1421_v32 }
 0x54d   :  { %v3146_v35 = vpop.eup %3145 }
 0x54e   :  { %v1428_v16 = vsub.f32 %v3699_v3, %v3146_v35  ;;  %v3148_v22 = vpop.eup %3147 }
 0x550   :  { %v1429_v23 = vmul.f32 %v3148_v22, %v1428_v16 }
 0x552   :  { %v3751_v42 = vadd.f32 %v3146_v35, %v1429_v23 }
 0x554   :  { %1432 = vst.msk [vmem:[#allocation6 + $0x20] sm:$0xff] %vm559_vm2, %v3751_v42  ;;  %1552 = vmatmul.mubr.f32.vlgmr.msra.gmra.mrb[10].mxu0 %v3751_v42  ;;  %2529 = vmatmul.mubr.f32.vlgmr.msra.gmra.mrb[18].mxu1 %v3751_v42 }
 0x555   :  { %2948 = vmatpush1.bf16.msra.mxu0 %v3627_v41  ;;  %2979 = vmatpush3.bf16.msra.mxu1 %v3724_v8 }
 0x556   :  { %2950 = vmatprep.subr.bf16.mxu0 %v3631_v49  ;;  %2980 = vmatprep.subr.bf16.mxu1 %v3255_v48 }
 0x557   :  { %1769 = vmatprep.mubr.f32.mxu0 %v3254_v0  ;;  %2563 = vmatprep.mubr.msk.f32.mxu1 %vm3256_vm1, %v3254_v0 }
 0x559   :  { %2952 = vmatpush1.bf16.msra.mxu0 %v3633_v54  ;;  %2982 = vmatpush3.bf16.msra.mxu1 %v3728_v26 }
 0x55a   :  { %2954 = vmatprep.subr.bf16.mxu0 %v3637_v57  ;;  %2983 = vmatprep.subr.bf16.mxu1 %v3255_v48 }
 0x55d   :  { %2956 = vmatpush1.bf16.msra.mxu0 %v3639_v2  ;;  %2985 = vmatpush3.bf16.msra.mxu1 %v3732_v50 }
 0x55e   :  { %2958 = vmatprep.subr.bf16.mxu0 %v3643_v6  ;;  %2986 = vmatprep.subr.bf16.mxu1 %v3255_v48 }
 0x561   :  { %2960 = vmatpush1.bf16.msra.mxu0 %v3645_v17  ;;  %2988 = vmatpush3.bf16.msra.mxu1 %v3648_v20 }
 0x562   :  { %2962 = vmatprep.subr.bf16.mxu0 %v3652_v28  ;;  %2989 = vmatprep.subr.bf16.mxu1 %v3255_v48 }
 0x565   :  { %2964 = vmatpush1.bf16.msra.mxu0 %v3655_v15  ;;  %2991 = vmatpush3.bf16.msra.mxu1 %v3658_v31 }
 0x566   :  { %2966 = vmatprep.subr.bf16.mxu0 %v3660_v33  ;;  %2992 = vmatprep.subr.bf16.mxu1 %v3255_v48 }
 0x569   :  { %2968 = vmatpush1.bf16.msra.mxu0 %v3663_v56  ;;  %2994 = vmatpush3.bf16.msra.mxu1 %v3667_v10 }
 0x56a   :  { %2970 = vmatprep.subr.bf16.mxu0 %v3669_v14  ;;  %2995 = vmatprep.subr.bf16.mxu1 %v3255_v48 }
 0x56d   :  { %2972 = vmatpush1.bf16.msra.mxu0 %v3673_v36  ;;  %2997 = vmatpush3.bf16.msra.mxu1 %v3677_v40 }
 0x56e   :  { %2974 = vmatprep.subr.bf16.mxu0 %v3679_v38  ;;  %2998 = vmatprep.subr.bf16.mxu1 %v3255_v48 }
 0x571   :  { %2976 = vmatpush1.bf16.msra.mxu0 %v3683_v39  ;;  %3000 = vmatpush3.bf16.msra.mxu1 %v3687_v44 }
 0x572   :  { %3002 = vmatprep.subr.bf16.mxu0 %v3625_v37  ;;  %3033 = vmatprep.subr.bf16.mxu1 %v3255_v48 }
 0x627   :  { %v1553_v59 = vpop.f32.mrb[10].mxu0  ;;  %v1624_v45 = vpop.f32.mrb[18].mxu1 }
 0x628   :  { %v3067_v53 = vadd.f32 %v1553_v59, %v3507_v58  ;;  %v1555_v63 = vpop.f32.mrb[11].mxu0  ;;  %v2530_v3 = vpop.f32.mrb[19].mxu1  ;;  %v1642_v37 = vadd.f32 %v3522_v27, %v1624_v45 }
 0x629   :  { %v3068_v43 = vadd.f32 %v1555_v63, %v3516_v11 }
 0x62a   :  { %v2153_v47 = vmul.f32 -1.442695, %v3067_v53 }
 0x62b   :  { %v2154_v19 = vmul.f32 -1.442695, %v3068_v43 }
 0x62c   :  { %3149 = vpow2.f32 %v2153_v47 }
 0x62d   :  { %3151 = vpow2.f32 %v2154_v19 }
 0x636   :  { %v3150_v21 = vpop.eup %3149 }
 0x637   :  { %v1632_v29 = vadd.f32 1.0, %v3150_v21  ;;  %v3152_v34 = vpop.eup %3151 }
 0x638   :  { %v1639_v61 = vadd.f32 1.0, %v3152_v34 }
 0x639   :  { %3153 = vrcp.f32 %v1632_v29 }
 0x643   :  { %v3154_v46 = vpop.eup %3153 }
 0x644   :  { %v1643_v51 = vmul.f32 %v3154_v46, %v1642_v37 }
 0x646   :  { %v1644_v52 = vadd.f32 %v1643_v51, %v3505_v55 }
 0x648   :  { %3155 = vtanh.f32 %v1644_v52 }
 0x649   :  { %3157 = vrcp.f32 %v1639_v61 }
 0x652   :  { %v3156_v60 = vpop.eup %3155 }
 0x653   :  { %v1646_v62 = vsub.f32 %v3751_v42, %v3156_v60  ;;  %v3158_v4 = vpop.eup %3157 }
 0x655   :  { %v1647_v5 = vmul.f32 %v3158_v4, %v1646_v62 }
 0x657   :  { %v1648_v9 = vadd.f32 %v3156_v60, %v1647_v5 }
 0x659   :  { %1650 = vst.msk [vmem:[#allocation6 + $0x28] sm:$0xff] %vm559_vm2, %v1648_v9  ;;  %1770 = vmatmul.mubr.f32.vlgmr.msra.gmra.mrb[12].mxu0 %v1648_v9  ;;  %2564 = vmatmul.mubr.f32.vlgmr.msra.gmra.mrb[20].mxu1 %v1648_v9 }
 0x65a   :  { %3004 = vmatpush1.bf16.msra.mxu0 %v3627_v41  ;;  %3035 = vmatpush3.bf16.msra.mxu1 %v3724_v8 }
 0x65b   :  { %3006 = vmatprep.subr.bf16.mxu0 %v3631_v49  ;;  %3036 = vmatprep.subr.bf16.mxu1 %v3255_v48 }
 0x65c   :  { %1987 = vmatprep.mubr.f32.mxu0 %v3254_v0  ;;  %2598 = vmatprep.mubr.msk.f32.mxu1 %vm3256_vm1, %v3254_v0 }
 0x65e   :  { %3008 = vmatpush1.bf16.msra.mxu0 %v3633_v54  ;;  %3038 = vmatpush3.bf16.msra.mxu1 %v3728_v26 }
 0x65f   :  { %3010 = vmatprep.subr.bf16.mxu0 %v3637_v57  ;;  %3039 = vmatprep.subr.bf16.mxu1 %v3255_v48 }
 0x662   :  { %3012 = vmatpush1.bf16.msra.mxu0 %v3639_v2  ;;  %3041 = vmatpush3.bf16.msra.mxu1 %v3732_v50 }
 0x663   :  { %3014 = vmatprep.subr.bf16.mxu0 %v3643_v6  ;;  %3042 = vmatprep.subr.bf16.mxu1 %v3255_v48 }
 0x666   :  { %3016 = vmatpush1.bf16.msra.mxu0 %v3645_v17  ;;  %3044 = vmatpush3.bf16.msra.mxu1 %v3648_v20 }
 0x667   :  { %3018 = vmatprep.subr.bf16.mxu0 %v3652_v28  ;;  %3045 = vmatprep.subr.bf16.mxu1 %v3255_v48 }
 0x66a   :  { %3020 = vmatpush1.bf16.msra.mxu0 %v3655_v15  ;;  %3047 = vmatpush3.bf16.msra.mxu1 %v3658_v31 }
 0x66b   :  { %3022 = vmatprep.subr.bf16.mxu0 %v3660_v33  ;;  %3048 = vmatprep.subr.bf16.mxu1 %v3255_v48 }
 0x66e   :  { %3024 = vmatpush1.bf16.msra.mxu0 %v3663_v56  ;;  %3050 = vmatpush3.bf16.msra.mxu1 %v3667_v10 }
 0x66f   :  { %3026 = vmatprep.subr.bf16.mxu0 %v3669_v14  ;;  %3051 = vmatprep.subr.bf16.mxu1 %v3255_v48 }
 0x672   :  { %3028 = vmatpush1.bf16.msra.mxu0 %v3673_v36  ;;  %3053 = vmatpush3.bf16.msra.mxu1 %v3677_v40 }
 0x673   :  { %3030 = vmatprep.subr.bf16.mxu0 %v3679_v38  ;;  %3054 = vmatprep.subr.bf16.mxu1 %v3255_v48 }
 0x676   :  { %3032 = vmatpush1.bf16.msra.mxu0 %v3683_v39  ;;  %3056 = vmatpush3.bf16.msra.mxu1 %v3687_v44 }
 0x72c   :  { %v1771_v0 = vpop.f32.mrb[12].mxu0  ;;  %v1842_v55 = vpop.f32.mrb[20].mxu1 }
 0x72d   :  { %v3069_v41 = vadd.f32 %v1771_v0, %v3507_v58  ;;  %v1773_v49 = vpop.f32.mrb[13].mxu0  ;;  %v2565_v54 = vpop.f32.mrb[21].mxu1  ;;  %v1860_v28 = vadd.f32 %v3522_v27, %v1842_v55 }
 0x72e   :  { %v3070_v2 = vadd.f32 %v1773_v49, %v3516_v11 }
 0x72f   :  { %v2155_v57 = vmul.f32 -1.442695, %v3069_v41 }
 0x730   :  { %v2156_v6 = vmul.f32 -1.442695, %v3070_v2 }
 0x731   :  { %3159 = vpow2.f32 %v2155_v57 }
 0x732   :  { %3161 = vpow2.f32 %v2156_v6 }
 0x73b   :  { %v3160_v17 = vpop.eup %3159 }
 0x73c   :  { %v1850_v20 = vadd.f32 1.0, %v3160_v17  ;;  %v3162_v48 = vpop.eup %3161 }
 0x73d   :  { %v1857_v56 = vadd.f32 1.0, %v3162_v48 }
 0x73e   :  { %3163 = vrcp.f32 %v1850_v20 }
 0x748   :  { %v3164_v15 = vpop.eup %3163 }
 0x749   :  { %v1861_v31 = vmul.f32 %v3164_v15, %v1860_v28 }
 0x74b   :  { %v1862_v33 = vadd.f32 %v1861_v31, %v3514_v7 }
 0x74d   :  { %3165 = vtanh.f32 %v1862_v33 }
 0x74e   :  { %3167 = vrcp.f32 %v1857_v56 }
 0x757   :  { %v3166_v10 = vpop.eup %3165 }
 0x758   :  { %v1864_v14 = vsub.f32 %v1648_v9, %v3166_v10  ;;  %v3168_v36 = vpop.eup %3167 }
 0x75a   :  { %v1865_v40 = vmul.f32 %v3168_v36, %v1864_v14 }
 0x75c   :  { %v1866_v38 = vadd.f32 %v3166_v10, %v1865_v40 }
 0x75e   :  { %1868 = vst.msk [vmem:[#allocation6 + $0x30] sm:$0xff] %vm559_vm2, %v1866_v38  ;;  %1988 = vmatmul.mubr.f32.vlgmr.msra.gmra.mrb[14].mxu0 %v1866_v38  ;;  %2599 = vmatmul.mubr.f32.vlgmr.msra.gmra.mrb[22].mxu1 %v1866_v38 }
 0x831   :  { %v1989_v39 = vpop.f32.mrb[14].mxu0  ;;  %v2060_v44 = vpop.f32.mrb[22].mxu1 }
 0x832   :  { %v3071_v8 = vadd.f32 %v1989_v39, %v3507_v58  ;;  %v1991_v26 = vpop.f32.mrb[15].mxu0  ;;  %v2600_v50 = vpop.f32.mrb[23].mxu1  ;;  %v2078_v30 = vadd.f32 %v3522_v27, %v2060_v44 }
 0x833   :  { %v3072_v7 = vadd.f32 %v1991_v26, %v3516_v11 }
 0x834   :  { %v2157_v13 = vmul.f32 -1.442695, %v3071_v8 }
 0x835   :  { %v2158_v12 = vmul.f32 -1.442695, %v3072_v7 }
 0x836   :  { %3169 = vpow2.f32 %v2157_v13 }
 0x837   :  { %3171 = vpow2.f32 %v2158_v12 }
 0x840   :  { %v3170_v18 = vpop.eup %3169 }
 0x841   :  { %v2068_v24 = vadd.f32 1.0, %v3170_v18  ;;  %v3172_v25 = vpop.eup %3171 }
 0x842   :  { %v2075_v22 = vadd.f32 1.0, %v3172_v25 }
 0x843   :  { %3173 = vrcp.f32 %v2068_v24 }
 0x84d   :  { %v3174_v32 = vpop.eup %3173 }
 0x84e   :  { %v2079_v35 = vmul.f32 %v3174_v32, %v2078_v30 }
 0x850   :  { %v2080_v16 = vadd.f32 %v2079_v35, %v3511_v1 }
 0x852   :  { %3175 = vtanh.f32 %v2080_v16 }
 0x853   :  { %3177 = vrcp.f32 %v2075_v22 }
 0x85c   :  { %v3176_v58 = vpop.eup %3175 }
 0x85d   :  { %v2082_v23 = vsub.f32 %v1866_v38, %v3176_v58  ;;  %v3178_v11 = vpop.eup %3177 }
 0x85f   :  { %v2083_v42 = vmul.f32 %v3178_v11, %v2082_v23 }
 0x861   :  { %v2084_v59 = vadd.f32 %v3176_v58, %v2083_v42 }
 0x863   :  { %2086 = vst.msk [vmem:[#allocation6 + $0x38] sm:$0xff] %vm559_vm2, %v2084_v59  ;;  %2087 = vst.msk [vmem:[#allocation7] sm:$0xff] %vm559_vm2, %v2084_v59 }
 0x864   :  { %3212 = shalt.err (!%p3209_p12)
}
 0x865   :  { %s3213_s20 = scalar_lea.hbm %s3878_s5, 1024 }
 0x866   :  { %p3214_p13 = scmp.ne.s32.totalorder %s3878_s5, %s3213_s20  ;;  %p3217_p0 = scmp.lt.u32.totalorder %s3213_s20, %s3878_s5 }
 0x868   :  { %p3219_p1 = pnand %p3217_p0, %p3214_p13 }
 0x86a   :  { %3222 = shalt.err (!%p3219_p1)
}
 0x86b   :  { %s3259_s25 = smov 128   ;;  %s3260_s26 = smov 8  }
 0x86c   :  { %2099 = dma.vmem_to_hbm [thread:$0]  %s2094_s15, 1024, %s3878_s5, [#allocation5], %s3259_s25, %s3259_s25, %s3260_s26  }
 0x86d   :  { %s3223_s28 = scalar_lea.vmem %s3840_s17, 128  ;;  %p3228_p3 = scmp.lt.s32.totalorder %s3840_s17, %s3840_s17 }
 0x86e   :  { %p3224_p2 = scmp.ne.s32.totalorder %s3840_s17, %s3223_s28  ;;  %p3229_p4 = scmp.lt.s32.totalorder %s3223_s28, %s3223_s28 }
 0x870   :  { %p3230_p5 = por %p3229_p4, %p3228_p3 }
 0x872   :  { %p3231_p6 = pnand %p3230_p5, %p3224_p2 }
 0x874   :  { %3234 = shalt.err (!%p3231_p6)
}
 0x875   :  { %s3235_s7 = scalar_lea.hbm %s3879_s6, 128 }
 0x876   :  { %p3236_p7 = scmp.ne.s32.totalorder %s3879_s6, %s3235_s7  ;;  %p3239_p8 = scmp.lt.u32.totalorder %s3235_s7, %s3879_s6 }
 0x878   :  { %p3241_p9 = pnand %p3239_p8, %p3236_p7 }
 0x87a   :  { %3244 = shalt.err (!%p3241_p9)
}
 0x87b   :  { %2109 = dma.vmem_to_hbm [thread:$0]  %s3840_s17, 128, %s3879_s6, [#allocation8]  }
 0x87c   :  { %3247 = dma.done.wait [#allocation5], 1024  }
 0x87d   :  { %3248 = vsyncadd [#allocation5], 4294966272 }
 0x87e   :  { %3249 = dma.done.wait [#allocation8], 128  }
 0x87f   :  { %3250 = vsyncadd [#allocation8], 4294967168 }
 0x880   :  { %2116 = vsyncpa [#allocation4], 1 }
 0x881   :  { %2117 = vsyncpa [#allocation5], 1 }
 0x882   :  { %2118 = vsyncpa [#allocation8], 1 }

</bundles_post_ra>
